<compile_context>
chip_gen: v5e
topology: v5e:2x2
jax: 0.10.0
libtpu: 0.0.40
codegen_flags: <defaults>
</compile_context>

<pallas_src>
import numpy as np
import jax
import jax.numpy as jnp
from jax import lax
from jax.experimental import pallas as pl
from jax.experimental.pallas import tpu as pltpu

# ----- small, self-consistent hyper-parameters (mirror TSCeption.__init__) -----
NUM_ELECTRODES = 4        # num_electrodes (even -> Sception2 padding == 0 branch)
NUM_T = 15                # num_T
NUM_S = 15                # num_S
IN_CHANNELS = 1
HID = 32                  # hid_channels
NUM_CLASSES = 2
SAMPLING_RATE = 16        # inception windows -> temporal kernel widths 8, 4, 2
TIME = 64                 # input time dimension
POOL = 8
BATCH = 4
NB = 2                    # samples stacked per grid step (matmul M dimension)
LEAKY_SLOPE = 0.01        # nn.LeakyReLU default
BN_EPS = 1e-5             # nn.BatchNorm2d default


def _leaky(v):
    return jnp.where(v > 0, v, LEAKY_SLOPE * v)


def _bn_affine(g, b, m, v):
    s = g / jnp.sqrt(v + BN_EPS)
    return s, b - m * s


# ----------------------------- Pallas kernel ----------------------------------
def _make_kernel(wt_offs, ns3, cs, hid, nc):
    """Returns the kernel body; static layout constants are closed over."""

    def kernel(x1_ref, x2_ref, x3_ref,          # im2col inputs, (1, NB*To_b, k_b*E)
               wt_ref, bt_ref,                  # packed temporal weights / biases
               pt1_ref, pt2_ref, pt3_ref,       # pool+concat matrices (NB*Tt, NB*To_b)
               ws_ref, ps_ref, wf_ref, mf_ref,  # Sception / pool / fusion / pool+mean
               w1_ref, w2_ref, vec_ref,         # fc weights + packed bias slab
               out_ref):                        # (1, NB, NUM_CLASSES)
        # ---- Tception: one dense matmul per branch + LeakyReLU; the constant
        # ---- pool matrix both averages over time and places each branch at its
        # ---- per-sample concat offset, so summing the three results == concat.
        out_t = None
        for b, (x_ref, p_ref) in enumerate(((x1_ref, pt1_ref),
                                            (x2_ref, pt2_ref),
                                            (x3_ref, pt3_ref))):
            r0, r1 = wt_offs[b]
            y = jnp.dot(x_ref[0], wt_ref[r0:r1, :],
                        preferred_element_type=jnp.float32)
            y = _leaky(y + bt_ref[b:b + 1, :])
            yp = jnp.dot(p_ref[...], y, preferred_element_type=jnp.float32)
            out_t = yp if out_t is None else out_t + yp
        # out_t: (NB*Tt, CT*E); BN_t is folded into ws_ref / vec_ref row 0.

        # ---- Sception (both branches fused into one matmul) + AvgPool(1,2);
        # ---- BN_s is folded into the fusion weights downstream.
        z = _leaky(jnp.dot(out_t, ws_ref[...], preferred_element_type=jnp.float32)
                   + vec_ref[0:1, 0:ns3])
        zp = jnp.dot(ps_ref[...], z, preferred_element_type=jnp.float32)   # (NB*Tt2, 3*CS)

        # ---- fusion conv (3,1) + LeakyReLU; AvgPool(1,4) + per-sample time
        # ---- mean are one constant matrix; BN_fusion folded into fc layer 1.
        fz = _leaky(jnp.dot(zp, wf_ref[...], preferred_element_type=jnp.float32)
                    + vec_ref[1:2, 0:cs])
        feat = jnp.dot(mf_ref[...], fz, preferred_element_type=jnp.float32)  # (NB, CS)

        # ---- fc: Linear -> ReLU -> Dropout -> Linear ----
        # TODO(synk): nn.Dropout / BatchNorm are modelled in eval mode; training-mode
        # RNG masks and batch statistics are not replicated.
        h = jnp.maximum(jnp.dot(feat, w1_ref[...], preferred_element_type=jnp.float32)
                        + vec_ref[2:3, 0:hid], 0.0)
        logits = (jnp.dot(h, w2_ref[...], preferred_element_type=jnp.float32)
                  + vec_ref[3:4, 0:nc])
        out_ref[0] = logits

    return kernel


# ------------------------------ wrapper (glue) ---------------------------------
def tsception_pallas(x_nchw, P, nb=NB):
    """x_nchw: (N, 1, E, T) float32.  Returns (out, out_4), each (N, NUM_CLASSES)."""
    N, cin, E, T = x_nchw.shape
    assert cin == IN_CHANNELS and E % 2 == 0
    CT, CS, E2 = NUM_T, NUM_S, E // 2
    NS3, NC = 3 * CS, NUM_CLASSES

    wins = [int(w * SAMPLING_RATE) for w in (0.5, 0.25, 0.125)]
    tps = [(T - k + 1) // POOL for k in wins]      # pooled time per branch
    tos = [tp * POOL for tp in tps]                # conv rows actually consumed (mult of 8)
    Tt = sum(tps)                                  # time length after Tception concat
    Tt2 = Tt // 2                                  # after Sception pool
    Tt3 = Tt2 // 4                                 # after fusion pool

    # --- batch grouping: NB samples per grid step ---------------------------
    n_pad = -(-N // nb) * nb
    G = n_pad // nb
    x_tm = jnp.transpose(x_nchw[:, 0, :, :], (0, 2, 1)).astype(jnp.float32)  # (N, T, E)
    if n_pad != N:
        x_tm = jnp.concatenate(
            [x_tm, jnp.zeros((n_pad - N, T, E), jnp.float32)], axis=0)

    # --- im2col inputs (layout plumbing only; all FLOPs stay in the kernel) --
    def im2col(k, to_u):
        cols = [x_tm[:, j:j + to_u, :] for j in range(k)]
        return jnp.concatenate(cols, axis=-1).reshape(G, nb * to_u, k * E)
    xims = [im2col(wins[b], tos[b]) for b in range(3)]

    # --- temporal weights: Kronecker-expanded to (k*E, CT*E), packed in a slab
    eye_e = jnp.eye(E, dtype=jnp.float32)

    def t_weight(w_raw):
        w2 = w_raw[:, 0, 0, :]                                  # (CT, k)
        k = w2.shape[1]
        return jnp.einsum('cj,ef->jecf', w2, eye_e).reshape(k * E, CT * E)

    wt_slab = jnp.concatenate(
        [t_weight(P['wt1']), t_weight(P['wt2']), t_weight(P['wt3'])], axis=0)
    wt_offs, r = [], 0
    for k in wins:
        wt_offs.append((r, r + k * E))
        r += k * E

    def rep_e(v):
        return jnp.repeat(v, E)[None, :]
    bt_slab = jnp.concatenate([rep_e(P['bt1']), rep_e(P['bt2']), rep_e(P['bt3'])], 0)

    # --- fold eval-mode BatchNorms into the following matmuls ----------------
    sct, sht = _bn_affine(P['bn_t_g'], P['bn_t_b'], P['bn_t_m'], P['bn_t_v'])
    scs, shs = _bn_affine(P['bn_s_g'], P['bn_s_b'], P['bn_s_m'], P['bn_s_v'])
    scf, shf = _bn_affine(P['bn_f_g'], P['bn_f_b'], P['bn_f_m'], P['bn_f_v'])
    sct_e, sht_e = rep_e(sct), rep_e(sht)                       # (1, CT*E)
    scs3, shs3 = jnp.tile(scs, 3)[None, :], jnp.tile(shs, 3)[None, :]

    # Sception: Sception1 + the two strided Sception2 halves as one matmul.
    ws1 = P['ws1'][:, :, :, 0].reshape(CS, CT * E).T            # (CT*E, CS)
    ws2_halves = []
    for rr in range(2):
        w = jnp.zeros((CS, CT, E), jnp.float32)
        w = w.at[:, :, rr * E2:(rr + 1) * E2].set(P['ws2'][:, :, :, 0])
        ws2_halves.append(w.reshape(CS, CT * E).T)
    ws_all = jnp.concatenate([ws1] + ws2_halves, axis=1)        # (CT*E, 3*CS)
    bs_all = jnp.concatenate([P['bs1'], P['bs2'], P['bs2']])[None, :]
    ws_all_f = sct_e.T * ws_all                                 # BN_t folded in
    bs_all_f = sht_e @ ws_all + bs_all

    wf = P['wf'][:, :, :, 0].transpose(2, 1, 0).reshape(3 * CS, CS)   # row = r*CS + c
    wf_f = scs3.T * wf                                          # BN_s folded in
    bf_f = shs3 @ wf + P['bf'][None, :]

    w1t = P['w1'].T                                             # (CS, HID)
    w1t_f = scf[:, None] * w1t                                  # BN_fusion folded in
    b1_f = shf[None, :] @ w1t + P['b1'][None, :]
    w2t = P['w2'].T                                             # (HID, NC)
    b2 = P['b2'][None, :]

    # --- constant pooling / concat / mean matrices (block-diag over samples) --
    def t_pool(to_u, tp, off):
        m = np.zeros((nb * Tt, nb * to_u), np.float32)
        for n in range(nb):
            for i in range(tp):
                m[n * Tt + off + i,
                  n * to_u + i * POOL:n * to_u + (i + 1) * POOL] = 1.0 / POOL
        return jnp.asarray(m)

    offs = [0, tps[0], tps[0] + tps[1]]
    pt_mats = [t_pool(tos[b], tps[b], offs[b]) for b in range(3)]

    ps = np.zeros((nb * Tt2, nb * Tt), np.float32)
    for n in range(nb):
        for i in range(Tt2):
            ps[n * Tt2 + i, n * Tt + 2 * i:n * Tt + 2 * i + 2] = 0.5
    ps = jnp.asarray(ps)

    mf = np.zeros((nb, nb * Tt2), np.float32)                   # AvgPool(1,4) + time mean
    for n in range(nb):
        mf[n, n * Tt2:n * Tt2 + 4 * Tt3] = 1.0 / (4 * Tt3)
    mf = jnp.asarray(mf)

    # --- pack the remaining small per-column vectors into one slab ----------
    vw = max(NS3, HID, NC)

    def padrow(v):
        return jnp.pad(v, ((0, 0), (0, vw - v.shape[1])))
    vec_slab = jnp.concatenate(
        [padrow(bs_all_f), padrow(bf_f), padrow(b1_f), padrow(b2)], axis=0)

    # --- pallas_call ---------------------------------------------------------
    kernel = _make_kernel(tuple(wt_offs), NS3, CS, HID, NC)

    args = (xims[0], xims[1], xims[2], wt_slab, bt_slab,
            pt_mats[0], pt_mats[1], pt_mats[2],
            ws_all_f, ps, wf_f, mf, w1t_f, w2t, vec_slab)

    def const_spec(a):
        zeros = (0,) * a.ndim
        return pl.BlockSpec(a.shape, lambda g, _z=zeros: _z)

    in_specs = [pl.BlockSpec((1,) + xims[b].shape[1:], lambda g: (g, 0, 0))
                for b in range(3)]
    in_specs += [const_spec(a) for a in args[3:]]

    out_shape = jax.ShapeDtypeStruct((G, nb, NC), jnp.float32)
    out_spec = pl.BlockSpec((1, nb, NC), lambda g: (g, 0, 0))

    grid_spec = pltpu.PrefetchScalarGridSpec(
        num_scalar_prefetch=0,
        grid=(G,),
        in_specs=in_specs,
        out_specs=out_spec,
    )
    out = pl.pallas_call(
        kernel,
        out_shape=out_shape,
        grid_spec=grid_spec,
        compiler_params=pltpu.CompilerParams(
            dimension_semantics=("parallel",)),
    )(*args)
    logits = out.reshape(G * nb, NC)[:N]
    return logits, logits          # (out, out_4) are identical in eval mode


# ----------------------- pure-JAX reference (for checking) ---------------------
def tsception_reference(x, P):
    def conv(inp, w, b, stride=(1, 1)):
        y = lax.conv_general_dilated(inp, w, window_strides=stride, padding='VALID',
                                     dimension_numbers=('NCHW', 'OIHW', 'NCHW'),
                                     precision=lax.Precision.HIGHEST)
        return y + b[None, :, None, None]

    def avgpool_w(y, p):
        n, c, h, w = y.shape
        wp = w // p
        return y[..., :wp * p].reshape(n, c, h, wp, p).mean(-1)

    def bn(y, g, b, m, v):
        g, b, m, v = [t[None, :, None, None] for t in (g, b, m, v)]
        return (y - m) / jnp.sqrt(v + BN_EPS) * g + b

    def block(inp, w, b, pool, stride=(1, 1)):
        return avgpool_w(_leaky(conv(inp, w, b, stride)), pool)

    y1 = block(x, P['wt1'], P['bt1'], POOL)
    y2 = block(x, P['wt2'], P['bt2'], POOL)
    y3 = block(x, P['wt3'], P['bt3'], POOL)
    out = jnp.concatenate([y1, y2, y3], axis=-1)
    out = bn(out, P['bn_t_g'], P['bn_t_b'], P['bn_t_m'], P['bn_t_v'])

    z1 = block(out, P['ws1'], P['bs1'], POOL // 4)
    z2 = block(out, P['ws2'], P['bs2'], POOL // 4, stride=(NUM_ELECTRODES // 2, 1))
    out_ = jnp.concatenate([z1, z2], axis=2)
    out_ = bn(out_, P['bn_s_g'], P['bn_s_b'], P['bn_s_m'], P['bn_s_v'])

    out_ = block(out_, P['wf'], P['bf'], 4)
    out_ = bn(out_, P['bn_f_g'], P['bn_f_b'], P['bn_f_m'], P['bn_f_v'])

    feat = jnp.squeeze(jnp.mean(out_, axis=-1), axis=-1)          # (N, CS)
    h = jnp.maximum(feat @ P['w1'].T + P['b1'], 0.0)
    logits = h @ P['w2'].T + P['b2']
    return logits, logits


# ------------------------- deterministic parameter init ------------------------
def init_params(key):
    wins = [int(0.5 * SAMPLING_RATE), int(0.25 * SAMPLING_RATE), int(0.125 * SAMPLING_RATE)]
    E, CT, CS, E2 = NUM_ELECTRODES, NUM_T, NUM_S, NUM_ELECTRODES // 2
    keys = iter(jax.random.split(key, 40))

    def w(shape, fan_in):
        return jax.random.normal(next(keys), shape, jnp.float32) / np.sqrt(fan_in)

    P = {}
    P['wt1'] = w((CT, 1, 1, wins[0]), wins[0]); P['bt1'] = w((CT,), wins[0])
    P['wt2'] = w((CT, 1, 1, wins[1]), wins[1]); P['bt2'] = w((CT,), wins[1])
    P['wt3'] = w((CT, 1, 1, wins[2]), wins[2]); P['bt3'] = w((CT,), wins[2])
    P['ws1'] = w((CS, CT, E, 1), CT * E);       P['bs1'] = w((CS,), CT * E)
    P['ws2'] = w((CS, CT, E2, 1), CT * E2);     P['bs2'] = w((CS,), CT * E2)
    P['wf'] = w((CS, CS, 3, 1), CS * 3);        P['bf'] = w((CS,), CS * 3)
    for name, c in (('t', CT), ('s', CS), ('f', CS)):
        P[f'bn_{name}_g'] = 1.0 + 0.1 * jax.random.normal(next(keys), (c,), jnp.float32)
        P[f'bn_{name}_b'] = 0.1 * jax.random.normal(next(keys), (c,), jnp.float32)
        P[f'bn_{name}_m'] = 0.1 * jax.random.normal(next(keys), (c,), jnp.float32)
        P[f'bn_{name}_v'] = 1.0 + 0.1 * jax.random.normal(next(keys), (c,), jnp.float32) ** 2
    P['w1'] = w((HID, CS), CS);                 P['b1'] = w((HID,), CS)
    P['w2'] = w((NUM_CLASSES, HID), HID);       P['b2'] = w((NUM_CLASSES,), HID)
    return P


if __name__ == "__main__":
    key = jax.random.PRNGKey(0)
    pkey, xkey = jax.random.split(key)
    P = init_params(pkey)
    x = jax.random.normal(xkey, (BATCH, IN_CHANNELS, NUM_ELECTRODES, TIME), jnp.float32)

    out, out4 = tsception_pallas(x, P)
    out, out4 = jax.block_until_ready((out, out4))

    ref_out, ref_out4 = tsception_reference(x, P)
    np.testing.assert_allclose(np.asarray(out), np.asarray(ref_out), rtol=2e-2, atol=2e-2)
    np.testing.assert_allclose(np.asarray(out4), np.asarray(ref_out4), rtol=2e-2, atol=2e-2)
    print("KERNEL_OK")
</pallas_src>

<mosaic_0001>
module attributes {stable_mosaic.version = 11 : i64} {
  func.func @kernel(%arg0: i32, %arg1: memref<1x112x32xf32, #tpu.memory_space<vmem>>, %arg2: memref<1x112x16xf32, #tpu.memory_space<vmem>>, %arg3: memref<1x112x8xf32, #tpu.memory_space<vmem>>, %arg4: memref<56x60xf32, #tpu.memory_space<vmem>>, %arg5: memref<3x60xf32, #tpu.memory_space<vmem>>, %arg6: memref<42x112xf32, #tpu.memory_space<vmem>>, %arg7: memref<42x112xf32, #tpu.memory_space<vmem>>, %arg8: memref<42x112xf32, #tpu.memory_space<vmem>>, %arg9: memref<60x45xf32, #tpu.memory_space<vmem>>, %arg10: memref<20x42xf32, #tpu.memory_space<vmem>>, %arg11: memref<45x15xf32, #tpu.memory_space<vmem>>, %arg12: memref<2x20xf32, #tpu.memory_space<vmem>>, %arg13: memref<15x32xf32, #tpu.memory_space<vmem>>, %arg14: memref<32x2xf32, #tpu.memory_space<vmem>>, %arg15: memref<4x45xf32, #tpu.memory_space<vmem>>, %arg16: memref<1x2x2xf32, #tpu.memory_space<vmem>>) attributes {dimension_semantics = [#tpu.dimension_semantics<parallel>], iteration_bounds = array<i64: 2>, scalar_prefetch = 0 : i64, scratch_operands = 0 : i64, tpu.core_type = #tpu.core_type<tc>, window_params = [{transform_indices = @transform_0, window_bounds = array<i64: 1, 112, 32>}, {transform_indices = @transform_1, window_bounds = array<i64: 1, 112, 16>}, {transform_indices = @transform_2, window_bounds = array<i64: 1, 112, 8>}, {pipeline_mode = #tpu.pipeline_mode<synchronous>, transform_indices = @transform_3, window_bounds = array<i64: 56, 60>}, {pipeline_mode = #tpu.pipeline_mode<synchronous>, transform_indices = @transform_4, window_bounds = array<i64: 3, 60>}, {pipeline_mode = #tpu.pipeline_mode<synchronous>, transform_indices = @transform_5, window_bounds = array<i64: 42, 112>}, {pipeline_mode = #tpu.pipeline_mode<synchronous>, transform_indices = @transform_6, window_bounds = array<i64: 42, 112>}, {pipeline_mode = #tpu.pipeline_mode<synchronous>, transform_indices = @transform_7, window_bounds = array<i64: 42, 112>}, {pipeline_mode = #tpu.pipeline_mode<synchronous>, transform_indices = @transform_8, window_bounds = array<i64: 60, 45>}, {pipeline_mode = #tpu.pipeline_mode<synchronous>, transform_indices = @transform_9, window_bounds = array<i64: 20, 42>}, {pipeline_mode = #tpu.pipeline_mode<synchronous>, transform_indices = @transform_10, window_bounds = array<i64: 45, 15>}, {pipeline_mode = #tpu.pipeline_mode<synchronous>, transform_indices = @transform_11, window_bounds = array<i64: 2, 20>}, {pipeline_mode = #tpu.pipeline_mode<synchronous>, transform_indices = @transform_12, window_bounds = array<i64: 15, 32>}, {pipeline_mode = #tpu.pipeline_mode<synchronous>, transform_indices = @transform_13, window_bounds = array<i64: 32, 2>}, {pipeline_mode = #tpu.pipeline_mode<synchronous>, transform_indices = @transform_14, window_bounds = array<i64: 4, 45>}, {transform_indices = @transform_15, window_bounds = array<i64: 1, 2, 2>}]} {
    %c0 = arith.constant 0 : index
    %c0_0 = arith.constant 0 : index
    %c0_1 = arith.constant 0 : index
    %0 = vector.load %arg1[%c0, %c0_0, %c0_1] : memref<1x112x32xf32, #tpu.memory_space<vmem>>, vector<1x112x32xf32>
    %1 = vector.shape_cast %0 : vector<1x112x32xf32> to vector<112x32xf32>
    %c0_2 = arith.constant 0 : index
    %c0_3 = arith.constant 0 : index
    %2 = vector.load %arg4[%c0_2, %c0_3] : memref<56x60xf32, #tpu.memory_space<vmem>>, vector<32x60xf32>
    %cst = arith.constant dense<0.000000e+00> : vector<112x60xf32>
    %3 = tpu.matmul %1, %2, %cst {dimension_numbers = #tpu.dot_dimension_numbers<[1], [0], [0], [1], [0, 0, 1, 1], [], []>} : vector<112x32xf32>, vector<32x60xf32>, vector<112x60xf32> -> vector<112x60xf32>
    %c0_4 = arith.constant 0 : index
    %c0_5 = arith.constant 0 : index
    %4 = vector.load %arg5[%c0_4, %c0_5] : memref<3x60xf32, #tpu.memory_space<vmem>>, vector<1x60xf32>
    %5 = vector.broadcast %4 : vector<1x60xf32> to vector<112x60xf32>
    %6 = arith.addf %3, %5 : vector<112x60xf32>
    %cst_6 = arith.constant 0.000000e+00 : f32
    %7 = vector.broadcast %cst_6 : f32 to vector<112x60xf32>
    %8 = arith.cmpf ogt, %6, %7 : vector<112x60xf32>
    %cst_7 = arith.constant 0.00999999977 : f32
    %9 = vector.broadcast %cst_7 : f32 to vector<112x60xf32>
    %10 = arith.mulf %9, %6 : vector<112x60xf32>
    %11 = arith.select %8, %6, %10 : vector<112x60xi1>, vector<112x60xf32>
    %c0_8 = arith.constant 0 : index
    %c0_9 = arith.constant 0 : index
    %12 = vector.load %arg6[%c0_8, %c0_9] : memref<42x112xf32, #tpu.memory_space<vmem>>, vector<42x112xf32>
    %cst_10 = arith.constant dense<0.000000e+00> : vector<42x60xf32>
    %13 = tpu.matmul %12, %11, %cst_10 {dimension_numbers = #tpu.dot_dimension_numbers<[1], [0], [0], [1], [0, 0, 1, 1], [], []>} : vector<42x112xf32>, vector<112x60xf32>, vector<42x60xf32> -> vector<42x60xf32>
    %c0_11 = arith.constant 0 : index
    %c0_12 = arith.constant 0 : index
    %c0_13 = arith.constant 0 : index
    %14 = vector.load %arg2[%c0_11, %c0_12, %c0_13] : memref<1x112x16xf32, #tpu.memory_space<vmem>>, vector<1x112x16xf32>
    %15 = vector.shape_cast %14 : vector<1x112x16xf32> to vector<112x16xf32>
    %c32 = arith.constant 32 : index
    %c0_14 = arith.constant 0 : index
    %16 = vector.load %arg4[%c32, %c0_14] : memref<56x60xf32, #tpu.memory_space<vmem>>, vector<16x60xf32>
    %cst_15 = arith.constant dense<0.000000e+00> : vector<112x60xf32>
    %17 = tpu.matmul %15, %16, %cst_15 {dimension_numbers = #tpu.dot_dimension_numbers<[1], [0], [0], [1], [0, 0, 1, 1], [], []>} : vector<112x16xf32>, vector<16x60xf32>, vector<112x60xf32> -> vector<112x60xf32>
    %c1 = arith.constant 1 : index
    %c0_16 = arith.constant 0 : index
    %18 = vector.load %arg5[%c1, %c0_16] : memref<3x60xf32, #tpu.memory_space<vmem>>, vector<1x60xf32>
    %19 = vector.broadcast %18 : vector<1x60xf32> to vector<112x60xf32>
    %20 = arith.addf %17, %19 : vector<112x60xf32>
    %cst_17 = arith.constant 0.000000e+00 : f32
    %21 = vector.broadcast %cst_17 : f32 to vector<112x60xf32>
    %22 = arith.cmpf ogt, %20, %21 : vector<112x60xf32>
    %cst_18 = arith.constant 0.00999999977 : f32
    %23 = vector.broadcast %cst_18 : f32 to vector<112x60xf32>
    %24 = arith.mulf %23, %20 : vector<112x60xf32>
    %25 = arith.select %22, %20, %24 : vector<112x60xi1>, vector<112x60xf32>
    %c0_19 = arith.constant 0 : index
    %c0_20 = arith.constant 0 : index
    %26 = vector.load %arg7[%c0_19, %c0_20] : memref<42x112xf32, #tpu.memory_space<vmem>>, vector<42x112xf32>
    %cst_21 = arith.constant dense<0.000000e+00> : vector<42x60xf32>
    %27 = tpu.matmul %26, %25, %cst_21 {dimension_numbers = #tpu.dot_dimension_numbers<[1], [0], [0], [1], [0, 0, 1, 1], [], []>} : vector<42x112xf32>, vector<112x60xf32>, vector<42x60xf32> -> vector<42x60xf32>
    %28 = arith.addf %13, %27 : vector<42x60xf32>
    %c0_22 = arith.constant 0 : index
    %c0_23 = arith.constant 0 : index
    %c0_24 = arith.constant 0 : index
    %29 = vector.load %arg3[%c0_22, %c0_23, %c0_24] : memref<1x112x8xf32, #tpu.memory_space<vmem>>, vector<1x112x8xf32>
    %30 = vector.shape_cast %29 : vector<1x112x8xf32> to vector<112x8xf32>
    %c48 = arith.constant 48 : index
    %c0_25 = arith.constant 0 : index
    %31 = vector.load %arg4[%c48, %c0_25] : memref<56x60xf32, #tpu.memory_space<vmem>>, vector<8x60xf32>
    %cst_26 = arith.constant dense<0.000000e+00> : vector<112x60xf32>
    %32 = tpu.matmul %30, %31, %cst_26 {dimension_numbers = #tpu.dot_dimension_numbers<[1], [0], [0], [1], [0, 0, 1, 1], [], []>} : vector<112x8xf32>, vector<8x60xf32>, vector<112x60xf32> -> vector<112x60xf32>
    %c2 = arith.constant 2 : index
    %c0_27 = arith.constant 0 : index
    %33 = vector.load %arg5[%c2, %c0_27] : memref<3x60xf32, #tpu.memory_space<vmem>>, vector<1x60xf32>
    %34 = vector.broadcast %33 : vector<1x60xf32> to vector<112x60xf32>
    %35 = arith.addf %32, %34 : vector<112x60xf32>
    %cst_28 = arith.constant 0.000000e+00 : f32
    %36 = vector.broadcast %cst_28 : f32 to vector<112x60xf32>
    %37 = arith.cmpf ogt, %35, %36 : vector<112x60xf32>
    %cst_29 = arith.constant 0.00999999977 : f32
    %38 = vector.broadcast %cst_29 : f32 to vector<112x60xf32>
    %39 = arith.mulf %38, %35 : vector<112x60xf32>
    %40 = arith.select %37, %35, %39 : vector<112x60xi1>, vector<112x60xf32>
    %c0_30 = arith.constant 0 : index
    %c0_31 = arith.constant 0 : index
    %41 = vector.load %arg8[%c0_30, %c0_31] : memref<42x112xf32, #tpu.memory_space<vmem>>, vector<42x112xf32>
    %cst_32 = arith.constant dense<0.000000e+00> : vector<42x60xf32>
    %42 = tpu.matmul %41, %40, %cst_32 {dimension_numbers = #tpu.dot_dimension_numbers<[1], [0], [0], [1], [0, 0, 1, 1], [], []>} : vector<42x112xf32>, vector<112x60xf32>, vector<42x60xf32> -> vector<42x60xf32>
    %43 = arith.addf %28, %42 : vector<42x60xf32>
    %c0_33 = arith.constant 0 : index
    %c0_34 = arith.constant 0 : index
    %44 = vector.load %arg9[%c0_33, %c0_34] : memref<60x45xf32, #tpu.memory_space<vmem>>, vector<60x45xf32>
    %cst_35 = arith.constant dense<0.000000e+00> : vector<42x45xf32>
    %45 = tpu.matmul %43, %44, %cst_35 {dimension_numbers = #tpu.dot_dimension_numbers<[1], [0], [0], [1], [0, 0, 1, 1], [], []>} : vector<42x60xf32>, vector<60x45xf32>, vector<42x45xf32> -> vector<42x45xf32>
    %c0_36 = arith.constant 0 : index
    %c0_37 = arith.constant 0 : index
    %46 = vector.load %arg15[%c0_36, %c0_37] : memref<4x45xf32, #tpu.memory_space<vmem>>, vector<1x45xf32>
    %47 = vector.broadcast %46 : vector<1x45xf32> to vector<42x45xf32>
    %48 = arith.addf %45, %47 : vector<42x45xf32>
    %cst_38 = arith.constant 0.000000e+00 : f32
    %49 = vector.broadcast %cst_38 : f32 to vector<42x45xf32>
    %50 = arith.cmpf ogt, %48, %49 : vector<42x45xf32>
    %cst_39 = arith.constant 0.00999999977 : f32
    %51 = vector.broadcast %cst_39 : f32 to vector<42x45xf32>
    %52 = arith.mulf %51, %48 : vector<42x45xf32>
    %53 = arith.select %50, %48, %52 : vector<42x45xi1>, vector<42x45xf32>
    %c0_40 = arith.constant 0 : index
    %c0_41 = arith.constant 0 : index
    %54 = vector.load %arg10[%c0_40, %c0_41] : memref<20x42xf32, #tpu.memory_space<vmem>>, vector<20x42xf32>
    %cst_42 = arith.constant dense<0.000000e+00> : vector<20x45xf32>
    %55 = tpu.matmul %54, %53, %cst_42 {dimension_numbers = #tpu.dot_dimension_numbers<[1], [0], [0], [1], [0, 0, 1, 1], [], []>} : vector<20x42xf32>, vector<42x45xf32>, vector<20x45xf32> -> vector<20x45xf32>
    %c0_43 = arith.constant 0 : index
    %c0_44 = arith.constant 0 : index
    %56 = vector.load %arg11[%c0_43, %c0_44] : memref<45x15xf32, #tpu.memory_space<vmem>>, vector<45x15xf32>
    %cst_45 = arith.constant dense<0.000000e+00> : vector<20x15xf32>
    %57 = tpu.matmul %55, %56, %cst_45 {dimension_numbers = #tpu.dot_dimension_numbers<[1], [0], [0], [1], [0, 0, 1, 1], [], []>} : vector<20x45xf32>, vector<45x15xf32>, vector<20x15xf32> -> vector<20x15xf32>
    %c1_46 = arith.constant 1 : index
    %c0_47 = arith.constant 0 : index
    %58 = vector.load %arg15[%c1_46, %c0_47] : memref<4x45xf32, #tpu.memory_space<vmem>>, vector<1x15xf32>
    %59 = vector.broadcast %58 : vector<1x15xf32> to vector<20x15xf32>
    %60 = arith.addf %57, %59 : vector<20x15xf32>
    %cst_48 = arith.constant 0.000000e+00 : f32
    %61 = vector.broadcast %cst_48 : f32 to vector<20x15xf32>
    %62 = arith.cmpf ogt, %60, %61 : vector<20x15xf32>
    %cst_49 = arith.constant 0.00999999977 : f32
    %63 = vector.broadcast %cst_49 : f32 to vector<20x15xf32>
    %64 = arith.mulf %63, %60 : vector<20x15xf32>
    %65 = arith.select %62, %60, %64 : vector<20x15xi1>, vector<20x15xf32>
    %c0_50 = arith.constant 0 : index
    %c0_51 = arith.constant 0 : index
    %66 = vector.load %arg12[%c0_50, %c0_51] : memref<2x20xf32, #tpu.memory_space<vmem>>, vector<2x20xf32>
    %cst_52 = arith.constant dense<0.000000e+00> : vector<2x15xf32>
    %67 = tpu.matmul %66, %65, %cst_52 {dimension_numbers = #tpu.dot_dimension_numbers<[1], [0], [0], [1], [0, 0, 1, 1], [], []>} : vector<2x20xf32>, vector<20x15xf32>, vector<2x15xf32> -> vector<2x15xf32>
    %c0_53 = arith.constant 0 : index
    %c0_54 = arith.constant 0 : index
    %68 = vector.load %arg13[%c0_53, %c0_54] : memref<15x32xf32, #tpu.memory_space<vmem>>, vector<15x32xf32>
    %cst_55 = arith.constant dense<0.000000e+00> : vector<2x32xf32>
    %69 = tpu.matmul %67, %68, %cst_55 {dimension_numbers = #tpu.dot_dimension_numbers<[1], [0], [0], [1], [0, 0, 1, 1], [], []>} : vector<2x15xf32>, vector<15x32xf32>, vector<2x32xf32> -> vector<2x32xf32>
    %c2_56 = arith.constant 2 : index
    %c0_57 = arith.constant 0 : index
    %70 = vector.load %arg15[%c2_56, %c0_57] : memref<4x45xf32, #tpu.memory_space<vmem>>, vector<1x32xf32>
    %71 = vector.broadcast %70 : vector<1x32xf32> to vector<2x32xf32>
    %72 = arith.addf %69, %71 : vector<2x32xf32>
    %cst_58 = arith.constant 0.000000e+00 : f32
    %73 = vector.broadcast %cst_58 : f32 to vector<2x32xf32>
    %74 = arith.maximumf %72, %73 : vector<2x32xf32>
    %c0_59 = arith.constant 0 : index
    %c0_60 = arith.constant 0 : index
    %75 = vector.load %arg14[%c0_59, %c0_60] : memref<32x2xf32, #tpu.memory_space<vmem>>, vector<32x2xf32>
    %cst_61 = arith.constant dense<0.000000e+00> : vector<2x2xf32>
    %76 = tpu.matmul %74, %75, %cst_61 {dimension_numbers = #tpu.dot_dimension_numbers<[1], [0], [0], [1], [0, 0, 1, 1], [], []>} : vector<2x32xf32>, vector<32x2xf32>, vector<2x2xf32> -> vector<2x2xf32>
    %c3 = arith.constant 3 : index
    %c0_62 = arith.constant 0 : index
    %77 = vector.load %arg15[%c3, %c0_62] : memref<4x45xf32, #tpu.memory_space<vmem>>, vector<1x2xf32>
    %78 = vector.broadcast %77 : vector<1x2xf32> to vector<2x2xf32>
    %79 = arith.addf %76, %78 : vector<2x2xf32>
    %c0_63 = arith.constant 0 : index
    %c0_64 = arith.constant 0 : index
    %c0_65 = arith.constant 0 : index
    %80 = vector.load %arg16[%c0_63, %c0_64, %c0_65] : memref<1x2x2xf32, #tpu.memory_space<vmem>>, vector<1x2x2xf32>
    %81 = vector.shape_cast %80 : vector<1x2x2xf32> to vector<2x2xf32>
    %82 = vector.shape_cast %79 : vector<2x2xf32> to vector<1x2x2xf32>
    tpu.vector_store %arg16[%c0_63, %c0_64, %c0_65], %82 {strides = array<i32>} : memref<1x2x2xf32, #tpu.memory_space<vmem>>, vector<1x2x2xf32>,
    return
  }
  func.func @transform_0(%arg0: i32) -> (i32, i32, i32) {
    %c0_i32 = arith.constant 0 : i32
    %c0_i32_0 = arith.constant 0 : i32
    %c0_i32_1 = arith.constant 0 : i32
    return %arg0, %c0_i32, %c0_i32_0 : i32, i32, i32
  }
  func.func @transform_1(%arg0: i32) -> (i32, i32, i32) {
    %c0_i32 = arith.constant 0 : i32
    %c0_i32_0 = arith.constant 0 : i32
    %c0_i32_1 = arith.constant 0 : i32
    return %arg0, %c0_i32, %c0_i32_0 : i32, i32, i32
  }
  func.func @transform_2(%arg0: i32) -> (i32, i32, i32) {
    %c0_i32 = arith.constant 0 : i32
    %c0_i32_0 = arith.constant 0 : i32
    %c0_i32_1 = arith.constant 0 : i32
    return %arg0, %c0_i32, %c0_i32_0 : i32, i32, i32
  }
  func.func @transform_3(%arg0: i32) -> (i32, i32) {
    %c0_i32 = arith.constant 0 : i32
    %c0_i32_0 = arith.constant 0 : i32
    %c0_i32_1 = arith.constant 0 : i32
    return %c0_i32, %c0_i32_0 : i32, i32
  }
  func.func @transform_4(%arg0: i32) -> (i32, i32) {
    %c0_i32 = arith.constant 0 : i32
    %c0_i32_0 = arith.constant 0 : i32
    %c0_i32_1 = arith.constant 0 : i32
    return %c0_i32, %c0_i32_0 : i32, i32
  }
  func.func @transform_5(%arg0: i32) -> (i32, i32) {
    %c0_i32 = arith.constant 0 : i32
    %c0_i32_0 = arith.constant 0 : i32
    %c0_i32_1 = arith.constant 0 : i32
    return %c0_i32, %c0_i32_0 : i32, i32
  }
  func.func @transform_6(%arg0: i32) -> (i32, i32) {
    %c0_i32 = arith.constant 0 : i32
    %c0_i32_0 = arith.constant 0 : i32
    %c0_i32_1 = arith.constant 0 : i32
    return %c0_i32, %c0_i32_0 : i32, i32
  }
  func.func @transform_7(%arg0: i32) -> (i32, i32) {
    %c0_i32 = arith.constant 0 : i32
    %c0_i32_0 = arith.constant 0 : i32
    %c0_i32_1 = arith.constant 0 : i32
    return %c0_i32, %c0_i32_0 : i32, i32
  }
  func.func @transform_8(%arg0: i32) -> (i32, i32) {
    %c0_i32 = arith.constant 0 : i32
    %c0_i32_0 = arith.constant 0 : i32
    %c0_i32_1 = arith.constant 0 : i32
    return %c0_i32, %c0_i32_0 : i32, i32
  }
  func.func @transform_9(%arg0: i32) -> (i32, i32) {
    %c0_i32 = arith.constant 0 : i32
    %c0_i32_0 = arith.constant 0 : i32
    %c0_i32_1 = arith.constant 0 : i32
    return %c0_i32, %c0_i32_0 : i32, i32
  }
  func.func @transform_10(%arg0: i32) -> (i32, i32) {
    %c0_i32 = arith.constant 0 : i32
    %c0_i32_0 = arith.constant 0 : i32
    %c0_i32_1 = arith.constant 0 : i32
    return %c0_i32, %c0_i32_0 : i32, i32
  }
  func.func @transform_11(%arg0: i32) -> (i32, i32) {
    %c0_i32 = arith.constant 0 : i32
    %c0_i32_0 = arith.constant 0 : i32
    %c0_i32_1 = arith.constant 0 : i32
    return %c0_i32, %c0_i32_0 : i32, i32
  }
  func.func @transform_12(%arg0: i32) -> (i32, i32) {
    %c0_i32 = arith.constant 0 : i32
    %c0_i32_0 = arith.constant 0 : i32
    %c0_i32_1 = arith.constant 0 : i32
    return %c0_i32, %c0_i32_0 : i32, i32
  }
  func.func @transform_13(%arg0: i32) -> (i32, i32) {
    %c0_i32 = arith.constant 0 : i32
    %c0_i32_0 = arith.constant 0 : i32
    %c0_i32_1 = arith.constant 0 : i32
    return %c0_i32, %c0_i32_0 : i32, i32
  }
  func.func @transform_14(%arg0: i32) -> (i32, i32) {
    %c0_i32 = arith.constant 0 : i32
    %c0_i32_0 = arith.constant 0 : i32
    %c0_i32_1 = arith.constant 0 : i32
    return %c0_i32, %c0_i32_0 : i32, i32
  }
  func.func @transform_15(%arg0: i32) -> (i32, i32, i32) {
    %c0_i32 = arith.constant 0 : i32
    %c0_i32_0 = arith.constant 0 : i32
    %c0_i32_1 = arith.constant 0 : i32
    return %arg0, %c0_i32, %c0_i32_0 : i32, i32, i32
  }
}

</mosaic_0001>

<bundles_post_ra>
// kernel: tpu_custom_call.1
= control target key start
LH: loop header
LB: loop body
LE: loop exit
PB: predicated region body
PF: predicated region fallthrough
CT: control target
= control target key end

     0   :  { %s2342_s0 = inlined_call_operand.vmem [shape: f32[2,112,32], index: 0, kind: input, shape index: {}]   ;;  %s2343_s1 = inlined_call_operand.vmem [shape: f32[2,112,16], index: 1, kind: input, shape index: {}]   ;;  %s2344_s2 = inlined_call_operand.vmem [shape: f32[2,112,8], index: 2, kind: input, shape index: {}]   ;;  %s2345_s3 = inlined_call_operand.vmem [shape: f32[56,60], index: 3, kind: input, shape index: {}]   ;;  %s2346_s4 = inlined_call_operand.vmem [shape: f32[3,60], index: 4, kind: input, shape index: {}]   ;;  %s2347_s5 = inlined_call_operand.vmem [shape: f32[42,112], index: 5, kind: input, shape index: {}]   ;;  %s2348_s6 = inlined_call_operand.vmem [shape: f32[42,112], index: 6, kind: input, shape index: {}]   ;;  %s2349_s7 = inlined_call_operand.vmem [shape: f32[42,112], index: 7, kind: input, shape index: {}]   ;;  %s2350_s8 = inlined_call_operand.vmem [shape: f32[60,45], index: 8, kind: input, shape index: {}]   ;;  %s2351_s9 = inlined_call_operand.vmem [shape: f32[20,42], index: 9, kind: input, shape index: {}]   ;;  %s2352_s10 = inlined_call_operand.vmem [shape: f32[45,15], index: 10, kind: input, shape index: {}]   ;;  %s2353_s11 = inlined_call_operand.vmem [shape: f32[2,20], index: 11, kind: input, shape index: {}]   ;;  %s2354_s12 = inlined_call_operand.vmem [shape: f32[15,32], index: 12, kind: input, shape index: {}]   ;;  %s2355_s13 = inlined_call_operand.vmem [shape: f32[32,2], index: 13, kind: input, shape index: {}]   ;;  %s2356_s14 = inlined_call_operand.vmem [shape: f32[4,45], index: 14, kind: input, shape index: {}]   ;;  %s2357_s15 = inlined_call_operand.hbm [shape: f32[2,2,2], index: 15, kind: output, shape index: {}]  }
   0x1   :  { %2362 = sst [smem:[#allocation9_spill]] %s2342_s0 }
   0x2   :  { %2363 = sst [smem:[#allocation10_spill]] %s2343_s1 }
   0x3   :  { %2364 = sst [smem:[#allocation11_spill]] %s2344_s2 }
   0x4   :  { %20 = vsyncpa [#allocation3], 0 }
   0x5   :  { %22 = vsyncpa [#allocation3 + $0x1], 0  ;;  %s1864_s18 = smov 0   ;;  %s1866_s19 = smov 0  }
   0x6   :  { %s1868_s20 = smov 0   ;;  %s1870_s21 = smov 0  }
   0x7 LB: > { %2365 = sst [smem:[#allocation5_spill]] %s1778_s20  ;;  %s1885_s22 = sadd.s32 4294967295, %s1782_s21   ;;  %s1782_s21 = sphi %s1870_s21, %s2375_s21   ;;  %s1778_s20 = sphi %s1868_s20, %s2377_s20   ;;  %s1774_s19 = sphi %s1866_s19, %s2379_s19   ;;  %s1770_s18 = sphi %s1864_s18, %s2378_s18  }
   0x8   : > { %s1581_s23 = sadd.s32 4294967294, %s1782_s21   ;;  %s1889_s24 = sadd.s32 1, %s1782_s21  }
   0x9   : > { %2366 = sst [smem:[#allocation6_spill]] %s1889_s24  ;;  %s365_s25 = sadd.s32 1, %s1778_s20 }
   0xa   : > { %s362_s26 = ssub.s32 %s1782_s21, %s1889_s24  ;;  %p375_p0 = scmp.ne.s32.totalorder %s1778_s20, %s1774_s19 }
   0xb   : > { %p363_p1 = scmp.eq.s32.totalorder %s362_s26, 0  ;;  %p376_p2 = scmp.eq.s32.totalorder %s1885_s22, 1 }
   0xc   : > { %p381_p3 = scmp.ne.s32.totalorder %s1774_s19, %s1770_s18  ;;  %p382_p4 = scmp.eq.s32.totalorder %s1581_s23, 1 }
   0xd   : > { %s1900_s27 = scalar_select %p363_p1, %s1778_s20, %s365_s25  }
   0xe   : > { %p1902_p5 = por %p376_p2, %p375_p0  ;;  %p1906_p6 = por %p382_p4, %p381_p3 }
   0xf   : > { %2367 = sst [smem:[#allocation7_spill]] %s1900_s27  ;;  %p1584_p7 = scmp.ge.s32.totalorder %s1782_s21, 1 }
  0x10   : > { %s2369_s29 = scalar_select %p1906_p6, 1, 0 }
  0x11   : > { %p460_p8 = scmp.lt.s32.totalorder %s1782_s21, 3 }
  0x12   : > { %2370 = sst [smem:[#allocation8_spill]] %s2369_s29 }
  0x13   : > { %p461_p9 = pnand %p1584_p7, %p460_p8 }
  0x14   : > { %p518_p10 = scmp.lt.s32.totalorder (!%p461_p9), %s1885_s22, 1  ;;  %s2371_s0 = sld [smem:[#allocation9_spill]] (!%p461_p9) }
  0x15   : > { %464 = sbr.rel (%p461_p9) target bundleno = 1604 (0x644), region = 80  ;;  %s2372_s1 = sld [smem:[#allocation10_spill]] (!%p461_p9) }
  0x16   : > { %s2373_s2 = sld [smem:[#allocation11_spill]] (!%p461_p9)  ;;  %s515_s27 = sand.u32 (!%p461_p9), 1, %s1774_s19  }
  0x1a   : > { %v550_v0 = vld [vmem:[%s2345_s3 + $0x18] sm:$0xff]  ;;  %v549_v1 = vld [vmem:[%s2345_s3 + $0x10] sm:$0xff]  ;;  %v718_v2 = vld [vmem:[%s2345_s3 + $0x28] sm:$0xff]  ;;  %s519_s30 = scalar_select %p518_p10, %s1885_s22, 1  ;;  %vm553_vm0 = vcmask 261120   ;;  %vm721_vm1 = vcmask 130048  }
  0x1b   : > { %608 = vmatpush.msra.mxu0 %v550_v0  ;;  %v717_v3 = vld [vmem:[%s2345_s3 + $0x20] sm:$0xff]  ;;  %v548_v4 = vld [vmem:[%s2345_s3 + $0x8] sm:$0xff]  ;;  %778 = vmatpush.msra.mxu1 %v718_v2 }
  0x1c   : > { %v547_v5 = vld [vmem:[%s2345_s3] sm:$0xff]  ;;  %s1932_s23 = smul.u32 112, %s519_s30 }
  0x1d   : > { %609 = vmatpush.msra.mxu0 %v549_v1  ;;  %779 = vmatpush.msra.mxu1 %v717_v3  ;;  %v2031_v60 = vld [vmem:[%s2346_s4] ss:$0 sm:$0xff]  ;;  %v2036_v61 = vld [vmem:[%s2346_s4 + $0x1] ss:$0 sm:$0xff] }
  0x1e   : > { %s1938_s24 = scalar_lea.vmem %s2371_s0, %s1932_s23  ;;  %s1944_s26 = scalar_lea.vmem %s2372_s1, %s1932_s23 }
  0x1f   : > { %610 = vmatpush.msra.mxu0 %v548_v4  ;;  %v533_v6 = vld [vmem:[%s1938_s24] sm:$0xff]  ;;  %v534_v8 = vld [vmem:[%s1938_s24 + $0x8] sm:$0xff]  ;;  %v535_v10 = vld [vmem:[%s1938_s24 + $0x10] sm:$0xff]  ;;  %s1483_s1 = scalar_lea.sflag [#allocation3], %s515_s27 }
  0x20   : > { %v703_v7 = vld [vmem:[%s1944_s26] sm:$0xff]  ;;  %v704_v9 = vld [vmem:[%s1944_s26 + $0x8] sm:$0xff]  ;;  %v705_v11 = vld [vmem:[%s1944_s26 + $0x10] sm:$0xff] }
  0x21   : > { %611 = vmatpush.msra.mxu0 %v547_v5  ;;  %1603 = vmatmul.msk.f32.vlgmr.msra.gmra.mxu1 %vm721_vm1, %v703_v7  ;;  %v536_v12 = vld [vmem:[%s1938_s24 + $0x18] sm:$0xff]  ;;  %v537_v14 = vld [vmem:[%s1938_s24 + $0x20] sm:$0xff]  ;;  %v538_v16 = vld [vmem:[%s1938_s24 + $0x28] sm:$0xff] }
  0x22   : > { %1589 = vmatmul.msk.f32.vlgmr.msra.gmra.mxu0 %vm553_vm0, %v533_v6  ;;  %v706_v13 = vld [vmem:[%s1944_s26 + $0x18] sm:$0xff]  ;;  %v707_v15 = vld [vmem:[%s1944_s26 + $0x20] sm:$0xff]  ;;  %v708_v17 = vld [vmem:[%s1944_s26 + $0x28] sm:$0xff] }
  0x23   : > { %v539_v18 = vld [vmem:[%s1938_s24 + $0x30] sm:$0xff]  ;;  %v540_v20 = vld [vmem:[%s1938_s24 + $0x38] sm:$0xff]  ;;  %v541_v22 = vld [vmem:[%s1938_s24 + $0x40] sm:$0xff] }
  0x24   : > { %v709_v19 = vld [vmem:[%s1944_s26 + $0x30] sm:$0xff]  ;;  %v710_v21 = vld [vmem:[%s1944_s26 + $0x38] sm:$0xff]  ;;  %v711_v23 = vld [vmem:[%s1944_s26 + $0x40] sm:$0xff] }
  0x25   : > { %v542_v24 = vld [vmem:[%s1938_s24 + $0x48] sm:$0xff]  ;;  %v543_v26 = vld [vmem:[%s1938_s24 + $0x50] sm:$0xff]  ;;  %v544_v28 = vld [vmem:[%s1938_s24 + $0x58] sm:$0xff] }
  0x26   : > { %v712_v25 = vld [vmem:[%s1944_s26 + $0x48] sm:$0xff]  ;;  %v713_v27 = vld [vmem:[%s1944_s26 + $0x50] sm:$0xff]  ;;  %v714_v29 = vld [vmem:[%s1944_s26 + $0x58] sm:$0xff] }
  0x27   : > { %v545_v30 = vld [vmem:[%s1938_s24 + $0x60] sm:$0xff]  ;;  %v546_v32 = vld [vmem:[%s1938_s24 + $0x68] sm:$0xff]  ;;  %s2139_s24 = scalar_lea.vmem %s2373_s2, %s1932_s23  ;;  %s1670_s23 = sshll.u32 %s1885_s22, 1 }
  0x28   : > { %v715_v31 = vld [vmem:[%s1944_s26 + $0x60] sm:$0xff]  ;;  %v716_v33 = vld [vmem:[%s1944_s26 + $0x68] sm:$0xff]  ;;  %s1493_s26 = scalar_lea.hbm %s2357_s15, %s1670_s23 }
  0x29   : > { %1604 = vmatmul.msk.f32.gmra.mxu1 %vm721_vm1, %v704_v9  ;;  %s1497_s20 = sshll.u32 %s1493_s26, 4  ;;  %s1498_s20 = int_to_ptr.hbm [resolvable:$true] %s1497_s20 }
  0x2a   : > { %1590 = vmatmul.msk.f32.gmra.mxu0 %vm553_vm0, %v534_v8  ;;  %s1734_s22 = sshra.s32 %s1498_s20, 4  ;;  %s1735_s22 = int_to_ptr.hbm [resolvable:$true] %s1734_s22 }
  0x2b   : > { %s1736_s2 = scalar_lea.hbm %s1735_s22, 2  ;;  %p1741_p0 = scmp.lt.s32.totalorder %s1735_s22, %s2357_s15 }
  0x2c   : > { %p1737_p11 = scmp.ne.s32.totalorder %s1735_s22, %s1736_s2 }
  0x2e   : > { %p1738_p12 = pnand %p1737_p11, %p1902_p5 }
  0x30   : > { %p1739_p13 = pneg %p1738_p12 }
  0x31   : > { %1605 = vmatmul.msk.f32.gmra.mxu1 %vm721_vm1, %v705_v11 }
  0x32   : > { %1591 = vmatmul.msk.f32.gmra.mxu0 %vm553_vm0, %v535_v10 }
  0x39   : > { %1606 = vmatmul.msk.f32.gmra.mxu1 %vm721_vm1, %v706_v13 }
  0x3a   : > { %1592 = vmatmul.msk.f32.gmra.mxu0 %vm553_vm0, %v536_v12 }
  0x41   : > { %1607 = vmatmul.msk.f32.gmra.mxu1 %vm721_vm1, %v707_v15 }
  0x42   : > { %1593 = vmatmul.msk.f32.gmra.mxu0 %vm553_vm0, %v537_v14 }
  0x49   : > { %1608 = vmatmul.msk.f32.gmra.mxu1 %vm721_vm1, %v708_v17 }
  0x4a   : > { %1594 = vmatmul.msk.f32.gmra.mxu0 %vm553_vm0, %v538_v16 }
  0x51   : > { %1609 = vmatmul.msk.f32.gmra.mxu1 %vm721_vm1, %v709_v19 }
  0x52   : > { %1595 = vmatmul.msk.f32.gmra.mxu0 %vm553_vm0, %v539_v18 }
  0x59   : > { %1610 = vmatmul.msk.f32.gmra.mxu1 %vm721_vm1, %v710_v21 }
  0x5a   : > { %1596 = vmatmul.msk.f32.gmra.mxu0 %vm553_vm0, %v540_v20 }
  0x61   : > { %1611 = vmatmul.msk.f32.gmra.mxu1 %vm721_vm1, %v711_v23 }
  0x62   : > { %1597 = vmatmul.msk.f32.gmra.mxu0 %vm553_vm0, %v541_v22 }
  0x69   : > { %1612 = vmatmul.msk.f32.gmra.mxu1 %vm721_vm1, %v712_v25 }
  0x6a   : > { %1598 = vmatmul.msk.f32.gmra.mxu0 %vm553_vm0, %v542_v24 }
  0x71   : > { %1613 = vmatmul.msk.f32.gmra.mxu1 %vm721_vm1, %v713_v27 }
  0x72   : > { %1599 = vmatmul.msk.f32.gmra.mxu0 %vm553_vm0, %v543_v26 }
  0x79   : > { %1614 = vmatmul.msk.f32.gmra.mxu1 %vm721_vm1, %v714_v29 }
  0x7a   : > { %1600 = vmatmul.msk.f32.gmra.mxu0 %vm553_vm0, %v544_v28 }
  0x81   : > { %1615 = vmatmul.msk.f32.gmra.mxu1 %vm721_vm1, %v715_v31 }
  0x82   : > { %1601 = vmatmul.msk.f32.gmra.mxu0 %vm553_vm0, %v545_v30 }
  0x89   : > { %1616 = vmatmul.msk.f32.gmra.mxu1 %vm721_vm1, %v716_v33 }
  0x8a   : > { %1602 = vmatmul.msk.f32.gmra.mxu0 %vm553_vm0, %v546_v32 }
  0x9e   : > { %v2004_v35 = vpop.f32.mrf.mxu1 }
  0x9f   : > { %v2002_v34 = vpop.f32.mrf.mxu0 }
  0xa6   : > { %v2008_v37 = vpop.f32.mrf.mxu1 }
  0xa7   : > { %v2006_v36 = vpop.f32.mrf.mxu0 }
  0xae   : > { %v2012_v39 = vpop.f32.mrf.mxu1 }
  0xaf   : > { %v2010_v38 = vpop.f32.mrf.mxu0 }
  0xb6   : > { %v2016_v41 = vpop.f32.mrf.mxu1 }
  0xb7   : > { %v2014_v40 = vpop.f32.mrf.mxu0 }
  0xbe   : > { %v2020_v43 = vpop.f32.mrf.mxu1 }
  0xbf   : > { %v2018_v42 = vpop.f32.mrf.mxu0 }
  0xc6   : > { %v2024_v45 = vpop.f32.mrf.mxu1 }
  0xc7   : > { %v2022_v44 = vpop.f32.mrf.mxu0 }
  0xc8   : > { %v629_v33 = vadd.f32 %v2031_v60, %v2022_v44 }
  0xce   : > { %v2026_v47 = vpop.f32.mrf.mxu1 }
  0xcf   : > { %v631_v46 = vpop.f32.mrf.mxu0 }
  0xd0   : > { %v632_v27 = vadd.f32 %v2031_v60, %v631_v46 }
  0xd2   : > { %vm661_vm1 = vcmp.gt.f32.partialorder %v632_v27, 0.0 }
  0xd6   : > { %v802_v49 = vpop.f32.mrf.mxu1 }
  0xd7   : > { %v634_v48 = vpop.f32.mrf.mxu0  ;;  %v803_v28 = vadd.f32 %v2036_v61, %v802_v49 }
  0xd8   : > { %v635_v21 = vadd.f32 %v2031_v60, %v634_v48  ;;  %v800_v48 = vadd.f32 %v2036_v61, %v2026_v47 }
  0xd9   : > { %vm830_vm15 = vcmp.gt.f32.partialorder %v803_v28, 0.0 }
  0xda   : > { %vm662_vm14 = vcmp.gt.f32.partialorder %v635_v21, 0.0 }
  0xde   : > { %v805_v51 = vpop.f32.mrf.mxu1 }
  0xdf   : > { %v637_v50 = vpop.f32.mrf.mxu0  ;;  %v806_v22 = vadd.f32 %v2036_v61, %v805_v51  ;;  %v676_v51 = vmul.f32 0.01, %v635_v21 }
  0xe0   : > { %v2042_v1 = vadd.f32 %v2031_v60, %v637_v50 }
  0xe1   : > { %v845_v50 = vmul.f32 0.01, %v806_v22  ;;  %vm831_vm13 = vcmp.gt.f32.partialorder %v806_v22, 0.0 }
  0xe2   : > { %v677_v32 = vmul.f32 0.01, %v2042_v1  ;;  %vm663_vm12 = vcmp.gt.f32.partialorder %v2042_v1, 0.0 }
  0xe4   : > { %v691_v47 = vsel %vm663_vm12, %v2042_v1, %v677_v32  ;;  %v702_v32 = vld [vmem:[%s2347_s5 + $0x28] sm:$0x3] }
  0xe6   : > { %v808_v53 = vpop.f32.mrf.mxu1 }
  0xe7   : > { %v640_v52 = vpop.f32.mrf.mxu0  ;;  %v809_v15 = vadd.f32 %v2036_v61, %v808_v53  ;;  %v797_v53 = vadd.f32 %v2036_v61, %v2024_v45  ;;  %v690_v45 = vsel %vm662_vm14, %v635_v21, %v676_v51  ;;  %v983_v51 = vld [vmem:[%s2139_s24 + $0x28] sm:$0xff] }
  0xe8   : > { %v641_v2 = vadd.f32 %v2031_v60, %v640_v52  ;;  %v626_v52 = vadd.f32 %v2031_v60, %v2018_v42  ;;  %v859_v42 = vsel %vm831_vm13, %v806_v22, %v845_v50  ;;  %v866_v22 = vld [vmem:[%s2348_s6 + $0x8] sm:$0xff]  ;;  %v982_v50 = vld [vmem:[%s2139_s24 + $0x20] sm:$0xff] }
  0xe9   : > { %v846_v31 = vmul.f32 0.01, %v809_v15  ;;  %vm832_vm11 = vcmp.gt.f32.partialorder %v809_v15, 0.0 }
  0xea   : > { %v678_v26 = vmul.f32 0.01, %v641_v2  ;;  %vm664_vm10 = vcmp.gt.f32.partialorder %v641_v2, 0.0  ;;  %v673_v1 = vmul.f32 0.01, %v626_v52 }
  0xeb   : > { %v860_v44 = vsel %vm832_vm11, %v809_v15, %v846_v31  ;;  %v870_v31 = vld [vmem:[%s2348_s6 + $0x28] sm:$0x3] }
  0xec   : > { %v692_v49 = vsel %vm664_vm10, %v641_v2, %v678_v26  ;;  %v617_v2 = vadd.f32 %v2031_v60, %v2006_v36  ;;  %v699_v26 = vld [vmem:[%s2347_s5 + $0x10] sm:$0xff] }
  0xee   : > { %v811_v55 = vpop.f32.mrf.mxu1  ;;  %vm656_vm11 = vcmp.gt.f32.partialorder %v617_v2, 0.0 }
  0xef   : > { %v643_v54 = vpop.f32.mrf.mxu0  ;;  %v812_v10 = vadd.f32 %v2036_v61, %v811_v55  ;;  %v675_v55 = vmul.f32 0.01, %v632_v27 }
  0xf0   : > { %v644_v3 = vadd.f32 %v2031_v60, %v643_v54  ;;  %v844_v54 = vmul.f32 0.01, %v803_v28 }
  0xf1   : > { %v847_v25 = vmul.f32 0.01, %v812_v10  ;;  %vm833_vm9 = vcmp.gt.f32.partialorder %v812_v10, 0.0 }
  0xf2   : > { %v679_v16 = vmul.f32 0.01, %v644_v3  ;;  %vm665_vm8 = vcmp.gt.f32.partialorder %v644_v3, 0.0 }
  0xf3   : > { %v861_v46 = vsel %vm833_vm9, %v812_v10, %v847_v25  ;;  %v782_v10 = vadd.f32 %v2036_v61, %v2004_v35  ;;  %v867_v25 = vld [vmem:[%s2348_s6 + $0x10] sm:$0xff] }
  0xf4   : > { %v693_v30 = vsel %vm665_vm8, %v644_v3, %v679_v16  ;;  %v788_v3 = vadd.f32 %v2036_v61, %v2012_v39 }
  0xf5   : > { %v837_v16 = vmul.f32 0.01, %v782_v10  ;;  %vm823_vm14 = vcmp.gt.f32.partialorder %v782_v10, 0.0 }
  0xf6   : > { %v814_v57 = vpop.f32.mrf.mxu1  ;;  %vm825_vm10 = vcmp.gt.f32.partialorder %v788_v3, 0.0 }
  0xf7   : > { %v646_v56 = vpop.f32.mrf.mxu0  ;;  %v815_v6 = vadd.f32 %v2036_v61, %v814_v57  ;;  %v794_v57 = vadd.f32 %v2036_v61, %v2020_v43  ;;  %v689_v43 = vsel %vm661_vm1, %v632_v27, %v675_v55  ;;  %v851_v21 = vsel %vm823_vm14, %v782_v10, %v837_v16  ;;  %v868_v27 = vld [vmem:[%s2348_s6 + $0x18] sm:$0xff] }
  0xf8   : > { %v647_v63 = vadd.f32 %v2031_v60, %v646_v56  ;;  %v623_v56 = vadd.f32 %v2031_v60, %v2014_v40  ;;  %v858_v40 = vsel %vm830_vm15, %v803_v28, %v844_v54  ;;  %vm871_vm15 = vcmask 916480   ;;  %v700_v28 = vld [vmem:[%s2347_s5 + $0x18] sm:$0xff]  ;;  %v988_v54 = vld [vmem:[%s2139_s24 + $0x50] sm:$0xff] }
  0xf9   : > { %v848_v20 = vmul.f32 0.01, %v815_v6  ;;  %vm834_vm7 = vcmp.gt.f32.partialorder %v815_v6, 0.0  ;;  %vm995_vm1 = vcmask 64512  }
  0xfa   : > { %v680_v12 = vmul.f32 0.01, %v647_v63  ;;  %vm666_vm6 = vcmp.gt.f32.partialorder %v647_v63, 0.0 }
  0xfb   : > { %v862_v29 = vsel %vm834_vm7, %v815_v6, %v848_v20  ;;  %v614_v6 = vadd.f32 %v2031_v60, %v2002_v34  ;;  %vm658_vm7 = vcmp.gt.f32.partialorder %v623_v56, 0.0  ;;  %v697_v20 = vld [vmem:[%s2347_s5] sm:$0xff] }
  0xfc   : > { %v694_v24 = vsel %vm666_vm6, %v647_v63, %v680_v12  ;;  %v791_v63 = vadd.f32 %v2036_v61, %v2016_v41  ;;  %vm827_vm6 = vcmp.gt.f32.partialorder %v794_v57, 0.0  ;;  %v670_v12 = vmul.f32 0.01, %v617_v2 }
  0xfd   : > { %v669_v15 = vmul.f32 0.01, %v614_v6  ;;  %vm655_vm13 = vcmp.gt.f32.partialorder %v614_v6, 0.0 }
  0xfe   : > { %v817_v59 = vpop.f32.mrf.mxu1  ;;  %vm826_vm8 = vcmp.gt.f32.partialorder %v791_v63, 0.0 }
  0xff   : > { %v649_v58 = vpop.f32.mrf.mxu0  ;;  %v818_v0 = vadd.f32 %v2036_v61, %v817_v59  ;;  %v674_v59 = vmul.f32 0.01, %v629_v33 }
 0x100   : > { %v650_v62 = vadd.f32 %v2031_v60, %v649_v58  ;;  %v843_v58 = vmul.f32 0.01, %v800_v48 }
 0x101   : > { %v849_v11 = vmul.f32 0.01, %v818_v0  ;;  %vm835_vm5 = vcmp.gt.f32.partialorder %v818_v0, 0.0 }
 0x102   : > { %v681_v9 = vmul.f32 0.01, %v650_v62  ;;  %vm667_vm2 = vcmp.gt.f32.partialorder %v650_v62, 0.0 }
 0x103   : > { %v863_v23 = vsel %vm835_vm5, %v818_v0, %v849_v11  ;;  %v842_v0 = vmul.f32 0.01, %v797_v53  ;;  %vm659_vm5 = vcmp.gt.f32.partialorder %v626_v52, 0.0 }
 0x104   : > { %v695_v19 = vsel %vm667_vm2, %v650_v62, %v681_v9  ;;  %v620_v62 = vadd.f32 %v2031_v60, %v2010_v38  ;;  %vm829_vm2 = vcmp.gt.f32.partialorder %v800_v48, 0.0  ;;  %v687_v39 = vsel %vm659_vm5, %v626_v52, %v673_v1  ;;  %v984_v52 = vld [vmem:[%s2139_s24 + $0x30] sm:$0xff] }
 0x105   : > { %v857_v38 = vsel %vm829_vm2, %v800_v48, %v843_v58  ;;  %v979_v48 = vld [vmem:[%s2139_s24 + $0x8] sm:$0xff] }
 0x106   : > { %v820_v5 = vpop.f32.mrf.mxu1  ;;  %v671_v9 = vmul.f32 0.01, %v620_v62  ;;  %vm657_vm9 = vcmp.gt.f32.partialorder %v620_v62, 0.0  ;;  %v991_v58 = vld [vmem:[%s2139_s24 + $0x68] sm:$0xff] }
 0x107   : > { %v652_v4 = vpop.f32.mrf.mxu0  ;;  %v821_v8 = vadd.f32 %v2036_v61, %v820_v5  ;;  %v672_v5 = vmul.f32 0.01, %v623_v56 }
 0x108   : > { %v653_v7 = vadd.f32 %v2031_v60, %v652_v4  ;;  %v841_v4 = vmul.f32 0.01, %v794_v57  ;;  %v839_v60 = vmul.f32 0.01, %v788_v3 }
 0x109   : > { %vm836_vm3 = vcmp.gt.f32.partialorder %v821_v8, 0.0  ;;  %v850_v13 = vmul.f32 0.01, %v821_v8  ;;  %v686_v34 = vsel %vm658_vm7, %v623_v56, %v672_v5  ;;  %v989_v56 = vld [vmem:[%s2139_s24 + $0x58] sm:$0xff] }
 0x10a   : > { %vm668_vm4 = vcmp.gt.f32.partialorder %v653_v7, 0.0  ;;  %v682_v14 = vmul.f32 0.01, %v653_v7  ;;  %v855_v11 = vsel %vm827_vm6, %v794_v57, %v841_v4  ;;  %v853_v35 = vsel %vm825_vm10, %v788_v3, %v839_v60 }
 0x10b   : > { %v864_v17 = vsel %vm836_vm3, %v821_v8, %v850_v13  ;;  %vm660_vm3 = vcmp.gt.f32.partialorder %v629_v33, 0.0  ;;  %v840_v8 = vmul.f32 0.01, %v791_v63  ;;  %v685_v13 = vsel %vm657_vm9, %v620_v62, %v671_v9 }
 0x10c   : > { %v696_v18 = vsel %vm668_vm4, %v653_v7, %v682_v14  ;;  %892 = vmatpush.msra.mxu2 %v864_v17  ;;  %vm828_vm4 = vcmp.gt.f32.partialorder %v797_v53, 0.0  ;;  %v688_v41 = vsel %vm660_vm3, %v629_v33, %v674_v59  ;;  %v785_v7 = vadd.f32 %v2036_v61, %v2008_v37  ;;  %v978_v33 = vld [vmem:[%s2139_s24] sm:$0xff] }
 0x10d   : > { %945 = vmatpush.msra.mxu3 %v696_v18  ;;  %v856_v36 = vsel %vm828_vm4, %v797_v53, %v842_v0  ;;  %v854_v37 = vsel %vm826_vm8, %v791_v63, %v840_v8  ;;  %v684_v61 = vsel %vm656_vm11, %v617_v2, %v670_v12  ;;  %v683_v18 = vsel %vm655_vm13, %v614_v6, %v669_v15  ;;  %v985_v53 = vld [vmem:[%s2139_s24 + $0x38] sm:$0xff] }
 0x10e   : > { %893 = vmatpush.msra.mxu2 %v863_v23  ;;  %v838_v14 = vmul.f32 0.01, %v785_v7  ;;  %vm824_vm12 = vcmp.gt.f32.partialorder %v785_v7, 0.0  ;;  %v698_v23 = vld [vmem:[%s2347_s5 + $0x8] sm:$0xff] }
 0x10f   : > { %946 = vmatpush.msra.mxu3 %v695_v19  ;;  %v865_v19 = vld [vmem:[%s2348_s6] sm:$0xff] }
 0x110   : > { %894 = vmatpush.msra.mxu2 %v862_v29  ;;  %v852_v17 = vsel %vm824_vm12, %v785_v7, %v838_v14  ;;  %v869_v29 = vld [vmem:[%s2348_s6 + $0x20] sm:$0xff] }
 0x111   : > { %947 = vmatpush.msra.mxu3 %v694_v24  ;;  %v992_v24 = vld [vmem:[%s2345_s3 + $0x30] sm:$0xff] }
 0x112   : > { %895 = vmatpush.msra.mxu2 %v861_v46  ;;  %v980_v46 = vld [vmem:[%s2139_s24 + $0x10] sm:$0xff] }
 0x113   : > { %948 = vmatpush.msra.mxu3 %v693_v30  ;;  %v701_v30 = vld [vmem:[%s2347_s5 + $0x20] sm:$0xff] }
 0x114   : > { %896 = vmatpush.msra.mxu2 %v860_v44  ;;  %v986_v44 = vld [vmem:[%s2139_s24 + $0x40] sm:$0xff] }
 0x115   : > { %949 = vmatpush.msra.mxu3 %v692_v49  ;;  %v981_v49 = vld [vmem:[%s2139_s24 + $0x18] sm:$0xff] }
 0x116   : > { %897 = vmatpush.msra.mxu2 %v859_v42  ;;  %v990_v42 = vld [vmem:[%s2139_s24 + $0x60] sm:$0xff] }
 0x117   : > { %950 = vmatpush.msra.mxu3 %v691_v47  ;;  %v987_v47 = vld [vmem:[%s2139_s24 + $0x48] sm:$0xff]  ;;  %s1585_s24 = sshll.u32 %s515_s27, 1 }
 0x118   : > { %898 = vmatpush.msra.mxu2 %v858_v40  ;;  %s517_s16 = scalar_lea.vmem [#allocation2], %s1585_s24  ;;  %s1740_s24 = scalar_lea.hbm %s2357_s15, 4 }
 0x119   : > { %951 = vmatpush.msra.mxu3 %v690_v45  ;;  %s1495_s17 = sshll.u32 %s517_s16, 4  ;;  %p1742_p1 = scmp.lt.s32.totalorder %s1740_s24, %s1736_s2  ;;  %s1496_s17 = int_to_ptr.vmem [resolvable:$true] %s1495_s17 }
 0x11a   : > { %899 = vmatpush.msra.mxu2 %v857_v38 }
 0x11b   : > { %952 = vmatpush.msra.mxu3 %v689_v43  ;;  %p1743_p2 = por %p1742_p1, %p1741_p0 }
 0x11c   : > { %900 = vmatpush.msra.mxu2 %v856_v36 }
 0x11d   : > { %953 = vmatpush.msra.mxu3 %v688_v41  ;;  %p1744_p3 = pnand %p1743_p2, %p1739_p13 }
 0x11e   : > { %901 = vmatpush.msra.mxu2 %v855_v11 }
 0x11f   : > { %954 = vmatpush.msra.mxu3 %v687_v39  ;;  %v1715_v39 = vld [vmem:[%s2346_s4 + $0x2] ss:$0 sm:$0xff] }
 0x120   : > { %902 = vmatpush.msra.mxu2 %v854_v37 }
 0x121   : > { %955 = vmatpush.msra.mxu3 %v686_v34 }
 0x122   : > { %903 = vmatpush.msra.mxu2 %v853_v35 }
 0x123   : > { %956 = vmatpush.msra.mxu3 %v685_v13 }
 0x124   : > { %904 = vmatpush.msra.mxu2 %v852_v17 }
 0x125   : > { %957 = vmatpush.msra.mxu3 %v684_v61 }
 0x126   : > { %905 = vmatpush.msra.mxu2 %v851_v21 }
 0x127   : > { %958 = vmatpush.msra.mxu3 %v683_v18  ;;  %1617 = vmatmul.msk.f32.vlgmr.msra.gmra.mxu2 %vm871_vm15, %v865_v19 }
 0x128   : > { %1623 = vmatmul.msk.f32.vlgmr.msra.gmra.mxu3 %vm871_vm15, %v697_v20  ;;  %1053 = vmatpush.msrb.mxu2 %v992_v24 }
 0x12f   : > { %1618 = vmatmul.msk.f32.gmra.mxu2 %vm871_vm15, %v866_v22 }
 0x130   : > { %1624 = vmatmul.msk.f32.gmra.mxu3 %vm871_vm15, %v698_v23 }
 0x137   : > { %1619 = vmatmul.msk.f32.gmra.mxu2 %vm871_vm15, %v867_v25 }
 0x138   : > { %1625 = vmatmul.msk.f32.gmra.mxu3 %vm871_vm15, %v699_v26 }
 0x13f   : > { %1620 = vmatmul.msk.f32.gmra.mxu2 %vm871_vm15, %v868_v27 }
 0x140   : > { %1626 = vmatmul.msk.f32.gmra.mxu3 %vm871_vm15, %v700_v28 }
 0x147   : > { %1621 = vmatmul.msk.f32.gmra.mxu2 %vm871_vm15, %v869_v29 }
 0x148   : > { %1627 = vmatmul.msk.f32.gmra.mxu3 %vm871_vm15, %v701_v30 }
 0x14f   : > { %1622 = vmatmul.msk.f32.gmra.mxu2 %vm871_vm15, %v870_v31 }
 0x150   : > { %1628 = vmatmul.msk.f32.gmra.mxu3 %vm871_vm15, %v702_v32 }
 0x157   : > { %1629 = vmatmul.msk.f32.vlgmr.msrb.gmra.mxu2 %vm995_vm1, %v978_v33 }
 0x15f   : > { %1630 = vmatmul.msk.f32.gmra.mxu2 %vm995_vm1, %v979_v48 }
 0x167   : > { %1631 = vmatmul.msk.f32.gmra.mxu2 %vm995_vm1, %v980_v46 }
 0x16f   : > { %1632 = vmatmul.msk.f32.gmra.mxu2 %vm995_vm1, %v981_v49 }
 0x177   : > { %1633 = vmatmul.msk.f32.gmra.mxu2 %vm995_vm1, %v982_v50 }
 0x17f   : > { %1634 = vmatmul.msk.f32.gmra.mxu2 %vm995_vm1, %v983_v51 }
 0x187   : > { %1635 = vmatmul.msk.f32.gmra.mxu2 %vm995_vm1, %v984_v52 }
 0x18f   : > { %1636 = vmatmul.msk.f32.gmra.mxu2 %vm995_vm1, %v985_v53 }
 0x197   : > { %1637 = vmatmul.msk.f32.gmra.mxu2 %vm995_vm1, %v986_v44 }
 0x19f   : > { %1638 = vmatmul.msk.f32.gmra.mxu2 %vm995_vm1, %v987_v47 }
 0x1a7   : > { %1639 = vmatmul.msk.f32.gmra.mxu2 %vm995_vm1, %v988_v54 }
 0x1aa   : > { %v2163_v55 = vpop.f32.mrf.mxu2 }
 0x1af   : > { %1640 = vmatmul.msk.f32.gmra.mxu2 %vm995_vm1, %v989_v56 }
 0x1b2   : > { %v2167_v57 = vpop.f32.mrf.mxu2 }
 0x1b7   : > { %1641 = vmatmul.msk.f32.gmra.mxu2 %vm995_vm1, %v990_v42  ;;  %v1139_v42 = vld [vmem:[%s2349_s7] sm:$0xff] }
 0x1ba   : > { %v2171_v45 = vpop.f32.mrf.mxu2 }
 0x1bf   : > { %1642 = vmatmul.msk.f32.gmra.mxu2 %vm995_vm1, %v991_v58 }
 0x1c2   : > { %v2175_v59 = vpop.f32.mrf.mxu2 }
 0x1ca   : > { %v2177_v62 = vpop.f32.mrf.mxu2 }
 0x1d2   : > { %v2179_v63 = vpop.f32.mrf.mxu2 }
 0x1da   : > { %v2181_v40 = vpop.f32.mrf.mxu2 }
 0x1db   : > { %v1056_v50 = vadd.f32 %v1715_v39, %v2181_v40  ;;  %v1140_v40 = vld [vmem:[%s2349_s7 + $0x8] sm:$0xff] }
 0x1dd   : > { %v1111_v54 = vmul.f32 0.01, %v1056_v50  ;;  %vm1097_vm1 = vcmp.gt.f32.partialorder %v1056_v50, 0.0 }
 0x1df   : > { %v1125_v58 = vsel %vm1097_vm1, %v1056_v50, %v1111_v54  ;;  %v1334_v54 = vld [vmem:[%s2352_s10 + $0x8] sm:$0xff] }
 0x1e2   : > { %v1058_v43 = vpop.f32.mrf.mxu2 }
 0x1e3   : > { %v1059_v48 = vadd.f32 %v1715_v39, %v1058_v43  ;;  %v1211_v43 = vld [vmem:[%s2350_s8 + $0x38] sm:$0xf] }
 0x1e5   : > { %v1112_v44 = vmul.f32 0.01, %v1059_v48  ;;  %vm1098_vm14 = vcmp.gt.f32.partialorder %v1059_v48, 0.0 }
 0x1e7   : > { %v1126_v56 = vsel %vm1098_vm14, %v1059_v48, %v1112_v44 }
 0x1ea   : > { %v1061_v0 = vpop.f32.mrf.mxu2 }
 0x1eb   : > { %v1062_v31 = vadd.f32 %v1715_v39, %v1061_v0  ;;  %v1210_v0 = vld [vmem:[%s2350_s8 + $0x30] sm:$0xff] }
 0x1ed   : > { %v1113_v52 = vmul.f32 0.01, %v1062_v31  ;;  %vm1099_vm13 = vcmp.gt.f32.partialorder %v1062_v31, 0.0 }
 0x1ef   : > { %v1127_v47 = vsel %vm1099_vm13, %v1062_v31, %v1113_v52  ;;  %v1337_v31 = vld [vmem:[%s2352_s10 + $0x20] sm:$0xff]  ;;  %v1335_v52 = vld [vmem:[%s2352_s10 + $0x10] sm:$0xff]  ;;  %vm1426_vm13 = vcmask 1046528  }
 0x1f2   : > { %v1064_v1 = vpop.f32.mrf.mxu2 }
 0x1f3   : > { %v1065_v28 = vadd.f32 %v1715_v39, %v1064_v1  ;;  %v1209_v1 = vld [vmem:[%s2350_s8 + $0x28] sm:$0xff] }
 0x1f5   : > { %v1114_v49 = vmul.f32 0.01, %v1065_v28  ;;  %vm1100_vm12 = vcmp.gt.f32.partialorder %v1065_v28, 0.0 }
 0x1f7   : > { %v1128_v53 = vsel %vm1100_vm12, %v1065_v28, %v1114_v49  ;;  %vm1341_vm12 = vcmask 367616  }
 0x1fa   : > { %v1067_v2 = vpop.f32.mrf.mxu2 }
 0x1fb   : > { %v1068_v25 = vadd.f32 %v1715_v39, %v1067_v2  ;;  %v1208_v2 = vld [vmem:[%s2350_s8 + $0x20] sm:$0xff] }
 0x1fd   : > { %v1115_v33 = vmul.f32 0.01, %v1068_v25  ;;  %vm1101_vm11 = vcmp.gt.f32.partialorder %v1068_v25, 0.0 }
 0x1ff   : > { %v1129_v51 = vsel %vm1101_vm11, %v1068_v25, %v1115_v33  ;;  %vm1293_vm11 = vcmask 343040  }
 0x202   : > { %v1070_v3 = vpop.f32.mrf.mxu2 }
 0x203   : > { %v1071_v22 = vadd.f32 %v1715_v39, %v1070_v3  ;;  %v1141_v3 = vld [vmem:[%s2349_s7 + $0x10] sm:$0xff] }
 0x205   : > { %v1116_v30 = vmul.f32 0.01, %v1071_v22  ;;  %vm1102_vm10 = vcmp.gt.f32.partialorder %v1071_v22, 0.0 }
 0x207   : > { %v1130_v46 = vsel %vm1102_vm10, %v1071_v22, %v1116_v30 }
 0x20a   : > { %v1073_v38 = vpop.f32.mrf.mxu2 }
 0x20b   : > { %v1074_v19 = vadd.f32 %v1715_v39, %v1073_v38  ;;  %v1207_v38 = vld [vmem:[%s2350_s8 + $0x18] sm:$0xff] }
 0x20d   : > { %v1117_v27 = vmul.f32 0.01, %v1074_v19  ;;  %vm1103_vm9 = vcmp.gt.f32.partialorder %v1074_v19, 0.0 }
 0x20f   : > { %v1131_v32 = vsel %vm1103_vm9, %v1074_v19, %v1117_v27  ;;  %v1716_v27 = vld [vmem:[%s2356_s14] ss:$0 sm:$0xff] }
 0x212   : > { %v1076_v41 = vpop.f32.mrf.mxu2 }
 0x213   : > { %v1077_v16 = vadd.f32 %v1715_v39, %v1076_v41  ;;  %v1206_v41 = vld [vmem:[%s2350_s8 + $0x10] sm:$0xff] }
 0x215   : > { %v1118_v24 = vmul.f32 0.01, %v1077_v16  ;;  %vm1104_vm8 = vcmp.gt.f32.partialorder %v1077_v16, 0.0 }
 0x217   : > { %v1132_v29 = vsel %vm1104_vm8, %v1077_v16, %v1118_v24 }
 0x21a   : > { %v1079_v4 = vpop.f32.mrf.mxu2 }
 0x21b   : > { %v1080_v15 = vadd.f32 %v1715_v39, %v1079_v4  ;;  %v1142_v4 = vld [vmem:[%s2349_s7 + $0x18] sm:$0xff] }
 0x21d   : > { %v1119_v21 = vmul.f32 0.01, %v1080_v15  ;;  %vm1105_vm7 = vcmp.gt.f32.partialorder %v1080_v15, 0.0 }
 0x21f   : > { %v1133_v26 = vsel %vm1105_vm7, %v1080_v15, %v1119_v21 }
 0x222   : > { %v1082_v5 = vpop.f32.mrf.mxu2 }
 0x223   : > { %v1083_v37 = vadd.f32 %v1715_v39, %v1082_v5  ;;  %v1143_v5 = vld [vmem:[%s2349_s7 + $0x20] sm:$0xff] }
 0x225   : > { %v1120_v18 = vmul.f32 0.01, %v1083_v37  ;;  %vm1106_vm6 = vcmp.gt.f32.partialorder %v1083_v37, 0.0 }
 0x227   : > { %v1134_v23 = vsel %vm1106_vm6, %v1083_v37, %v1120_v18 }
 0x22a   : > { %v1085_v6 = vpop.f32.mrf.mxu2 }
 0x22b   : > { %v1086_v34 = vadd.f32 %v1715_v39, %v1085_v6  ;;  %v1144_v6 = vld [vmem:[%s2349_s7 + $0x28] sm:$0x3] }
 0x22d   : > { %v1121_v61 = vmul.f32 0.01, %v1086_v34  ;;  %vm1107_vm5 = vcmp.gt.f32.partialorder %v1086_v34, 0.0 }
 0x22f   : > { %v1135_v20 = vsel %vm1107_vm5, %v1086_v34, %v1121_v61 }
 0x232   : > { %v1088_v7 = vpop.f32.mrf.mxu2 }
 0x233   : > { %v1089_v10 = vadd.f32 %v1715_v39, %v1088_v7  ;;  %v960_v7 = vpop.f32.mrf.mxu3 }
 0x235   : > { %v1122_v14 = vmul.f32 0.01, %v1089_v10  ;;  %vm1108_vm4 = vcmp.gt.f32.partialorder %v1089_v10, 0.0 }
 0x237   : > { %v1136_v17 = vsel %vm1108_vm4, %v1089_v10, %v1122_v14  ;;  %vm1303_vm4 = vcmask 1041408  }
 0x23a   : > { %v1091_v36 = vpop.f32.mrf.mxu2 }
 0x23b   : > { %v1092_v8 = vadd.f32 %v1715_v39, %v1091_v36  ;;  %v963_v36 = vpop.f32.mrf.mxu3 }
 0x23d   : > { %v1123_v12 = vmul.f32 0.01, %v1092_v8  ;;  %vm1109_vm3 = vcmp.gt.f32.partialorder %v1092_v8, 0.0 }
 0x23f   : > { %v1137_v35 = vsel %vm1109_vm3, %v1092_v8, %v1123_v12  ;;  %v1205_v8 = vld [vmem:[%s2350_s8 + $0x8] sm:$0xff]  ;;  %vm1351_vm3 = vcmask 1044480  }
 0x242   : > { %v1094_v9 = vpop.f32.mrf.mxu2 }
 0x243   : > { %v1095_v11 = vadd.f32 %v1715_v39, %v1094_v9  ;;  %v966_v39 = vpop.f32.mrf.mxu3  ;;  %v1204_v9 = vld [vmem:[%s2350_s8] sm:$0xff] }
 0x245   : > { %vm1110_vm2 = vcmp.gt.f32.partialorder %v1095_v11, 0.0  ;;  %v1124_v60 = vmul.f32 0.01, %v1095_v11 }
 0x247   : > { %v1138_v13 = vsel %vm1110_vm2, %v1095_v11, %v1124_v60  ;;  %vm1233_vm2 = vcmask 1043456   ;;  %v961_v60 = vadd.f32 %v960_v7, %v2163_v55  ;;  %v1418_v7 = vld [vmem:[%s2354_s12] sm:$0xff] }
 0x248   : > { %1165 = vmatpush.msrb.mxu3 %v1138_v13  ;;  %1649 = vmatpush.msk.msrb.mxu1 %vm1233_vm2, %v1211_v43  ;;  %v964_v13 = vadd.f32 %v963_v36, %v2167_v57 }
 0x24a   : > { %1166 = vmatpush.msrb.mxu3 %v1137_v35  ;;  %1246 = vmatpush.msrb.mxu1 %v1210_v0  ;;  %v967_v35 = vadd.f32 %v966_v39, %v2171_v45  ;;  %v1290_v0 = vld [vmem:[%s2351_s9] sm:$0xff] }
 0x24b   : > { %v969_v10 = vpop.f32.mrf.mxu3 }
 0x24c   : > { %1167 = vmatpush.msrb.mxu3 %v1136_v17  ;;  %1247 = vmatpush.msrb.mxu1 %v1209_v1  ;;  %v970_v17 = vadd.f32 %v969_v10, %v2175_v59 }
 0x24e   : > { %1168 = vmatpush.msrb.mxu3 %v1135_v20  ;;  %1248 = vmatpush.msrb.mxu1 %v1208_v2  ;;  %v1291_v2 = vld [vmem:[%s2351_s9 + $0x8] sm:$0xff] }
 0x250   : > { %1169 = vmatpush.msrb.mxu3 %v1134_v23  ;;  %1249 = vmatpush.msrb.mxu1 %v1207_v38  ;;  %v1333_v38 = vld [vmem:[%s2352_s10] sm:$0xff] }
 0x252   : > { %1170 = vmatpush.msrb.mxu3 %v1133_v26  ;;  %1250 = vmatpush.msrb.mxu1 %v1206_v41 }
 0x253   : > { %v972_v11 = vpop.f32.mrf.mxu3 }
 0x254   : > { %1171 = vmatpush.msrb.mxu3 %v1132_v29  ;;  %1251 = vmatpush.msrb.mxu1 %v1205_v8  ;;  %v973_v19 = vadd.f32 %v972_v11, %v2177_v62  ;;  %v1717_v8 = vld [vmem:[%s2356_s14 + $0x1] ss:$0 sm:$0xff] }
 0x256   : > { %1172 = vmatpush.msrb.mxu3 %v1131_v32  ;;  %1252 = vmatpush.msrb.mxu1 %v1204_v9 }
 0x258   : > { %1173 = vmatpush.msrb.mxu3 %v1130_v46  ;;  %v1336_v46 = vld [vmem:[%s2352_s10 + $0x18] sm:$0xff] }
 0x25a   : > { %1174 = vmatpush.msrb.mxu3 %v1129_v51 }
 0x25b   : > { %v975_v34 = vpop.f32.mrf.mxu3 }
 0x25c   : > { %1175 = vmatpush.msrb.mxu3 %v1128_v53  ;;  %v976_v21 = vadd.f32 %v975_v34, %v2179_v63  ;;  %v1338_v63 = vld [vmem:[%s2352_s10 + $0x28] sm:$0x1f] }
 0x25e   : > { %1176 = vmatpush.msrb.mxu3 %v1127_v47 }
 0x260   : > { %1177 = vmatpush.msrb.mxu3 %v1126_v56 }
 0x262   : > { %1178 = vmatpush.msrb.mxu3 %v1125_v58 }
 0x263   : > { %1643 = vmatmul.msk.f32.vlgmr.msrb.gmra.mxu3 %vm871_vm15, %v1139_v42 }
 0x264   : > { %1660 = vmatpush.msk.msra.mxu3 %vm1351_vm3, %v1338_v63  ;;  %vm1391_vm3 = vcmask 162816  }
 0x266   : > { %1366 = vmatpush.msra.mxu3 %v1337_v31 }
 0x268   : > { %1367 = vmatpush.msra.mxu3 %v1336_v46 }
 0x26a   : > { %1368 = vmatpush.msra.mxu3 %v1335_v52 }
 0x26b   : > { %1644 = vmatmul.msk.f32.gmra.mxu3 %vm871_vm15, %v1140_v40 }
 0x26c   : > { %1369 = vmatpush.msra.mxu3 %v1334_v54 }
 0x26e   : > { %1370 = vmatpush.msra.mxu3 %v1333_v38 }
 0x273   : > { %1645 = vmatmul.msk.f32.gmra.mxu3 %vm871_vm15, %v1141_v3  ;;  %v1292_v3 = vld [vmem:[%s2351_s9 + $0x10] sm:$0xf] }
 0x27b   : > { %1646 = vmatmul.msk.f32.gmra.mxu3 %vm871_vm15, %v1142_v4 }
 0x283   : > { %1647 = vmatmul.msk.f32.gmra.mxu3 %vm871_vm15, %v1143_v5 }
 0x28b   : > { %1648 = vmatmul.msk.f32.gmra.mxu3 %vm871_vm15, %v1144_v6  ;;  %vm1214_vm15 = vcmask 490496   ;;  %v1419_v6 = vld [vmem:[%s2354_s12 + $0x8] sm:$0x7f] }
 0x28c   : > { %1666 = vmatpush.msk.msrb.mxu3 %vm1426_vm13, %v1419_v6 }
 0x28e   : > { %1445 = vmatpush.msrb.mxu3 %v1418_v7 }
 0x2e6   : > { %v1180_v12 = vpop.f32.mrf.mxu3 }
 0x2e7   : > { %v1198_v37 = vadd.f32 %v1180_v12, %v961_v60 }
 0x2e9   : > { %1650 = vmatmul.msk.f32.vlgmr.msrb.gmra.mxu1 %vm1214_vm15, %v1198_v37 }
 0x2ee   : > { %v1183_v14 = vpop.f32.mrf.mxu3 }
 0x2ef   : > { %v1199_v15 = vadd.f32 %v1183_v14, %v964_v13 }
 0x2f1   : > { %1651 = vmatmul.msk.f32.gmra.mxu1 %vm1214_vm15, %v1199_v15  ;;  %v1390_v15 = vld [vmem:[%s2353_s11] sm:$0x3] }
 0x2f6   : > { %v1186_v61 = vpop.f32.mrf.mxu3 }
 0x2f7   : > { %v1200_v16 = vadd.f32 %v1186_v61, %v967_v35  ;;  %v1454_v61 = vld [vmem:[%s2355_s13 + $0x18] sm:$0xff] }
 0x2f9   : > { %1652 = vmatmul.msk.f32.gmra.mxu1 %vm1214_vm15, %v1200_v16  ;;  %v1453_v16 = vld [vmem:[%s2355_s13 + $0x10] sm:$0xff] }
 0x2fe   : > { %v1189_v55 = vpop.f32.mrf.mxu3 }
 0x2ff   : > { %v1201_v18 = vadd.f32 %v1189_v55, %v970_v17  ;;  %v1452_v55 = vld [vmem:[%s2355_s13 + $0x8] sm:$0xff] }
 0x301   : > { %1653 = vmatmul.msk.f32.gmra.mxu1 %vm1214_vm15, %v1201_v18  ;;  %v1451_v18 = vld [vmem:[%s2355_s13] sm:$0xff] }
 0x306   : > { %v1192_v20 = vpop.f32.mrf.mxu3 }
 0x307   : > { %v1202_v57 = vadd.f32 %v1192_v20, %v973_v19  ;;  %v1718_v19 = vld [vmem:[%s2356_s14 + $0x2] ss:$0 sm:$0xff] }
 0x309   : > { %1654 = vmatmul.msk.f32.gmra.mxu1 %vm1214_vm15, %v1202_v57 }
 0x30e   : > { %v1195_v22 = vpop.f32.mrf.mxu3 }
 0x30f   : > { %v1203_v45 = vadd.f32 %v1195_v22, %v976_v21  ;;  %v1719_v22 = vld [vmem:[%s2356_s14 + $0x3] ss:$0 sm:$0xff] }
 0x311   : > { %1655 = vmatmul.msk.f32.gmra.mxu1 %vm1214_vm15, %v1203_v45 }
 0x366   : > { %v1254_v23 = vpop.f32.mrf.mxu1 }
 0x367   : > { %v1255_v53 = vadd.f32 %v1716_v27, %v1254_v23 }
 0x369   : > { %v1278_v40 = vmul.f32 0.01, %v1255_v53  ;;  %vm1272_vm10 = vcmp.gt.f32.partialorder %v1255_v53, 0.0 }
 0x36b   : > { %v1284_v1 = vsel %vm1272_vm10, %v1255_v53, %v1278_v40 }
 0x36e   : > { %v1257_v24 = vpop.f32.mrf.mxu1 }
 0x36f   : > { %v1258_v49 = vadd.f32 %v1716_v27, %v1257_v24 }
 0x371   : > { %v1279_v42 = vmul.f32 0.01, %v1258_v49  ;;  %vm1273_vm9 = vcmp.gt.f32.partialorder %v1258_v49, 0.0 }
 0x373   : > { %v1285_v43 = vsel %vm1273_vm9, %v1258_v49, %v1279_v42 }
 0x376   : > { %v1260_v25 = vpop.f32.mrf.mxu1 }
 0x377   : > { %v1261_v32 = vadd.f32 %v1716_v27, %v1260_v25 }
 0x379   : > { %v1280_v47 = vmul.f32 0.01, %v1261_v32  ;;  %vm1274_vm8 = vcmp.gt.f32.partialorder %v1261_v32, 0.0 }
 0x37b   : > { %v1286_v58 = vsel %vm1274_vm8, %v1261_v32, %v1280_v47 }
 0x37e   : > { %v1263_v59 = vpop.f32.mrf.mxu1 }
 0x37f   : > { %v1264_v29 = vadd.f32 %v1716_v27, %v1263_v59 }
 0x381   : > { %v1281_v51 = vmul.f32 0.01, %v1264_v29  ;;  %vm1275_vm7 = vcmp.gt.f32.partialorder %v1264_v29, 0.0 }
 0x383   : > { %v1287_v56 = vsel %vm1275_vm7, %v1264_v29, %v1281_v51 }
 0x386   : > { %v1266_v26 = vpop.f32.mrf.mxu1 }
 0x387   : > { %v1267_v62 = vadd.f32 %v1716_v27, %v1266_v26 }
 0x389   : > { %v1282_v48 = vmul.f32 0.01, %v1267_v62  ;;  %vm1276_vm6 = vcmp.gt.f32.partialorder %v1267_v62, 0.0 }
 0x38b   : > { %v1288_v44 = vsel %vm1276_vm6, %v1267_v62, %v1282_v48 }
 0x38e   : > { %v1269_v28 = vpop.f32.mrf.mxu1 }
 0x38f   : > { %v1270_v30 = vadd.f32 %v1716_v27, %v1269_v28 }
 0x391   : > { %v1283_v33 = vmul.f32 0.01, %v1270_v30  ;;  %vm1277_vm5 = vcmp.gt.f32.partialorder %v1270_v30, 0.0 }
 0x393   : > { %v1289_v50 = vsel %vm1277_vm5, %v1270_v30, %v1283_v33 }
 0x394   : > { %1656 = vmatpush.msk.msrb.mxu0 %vm1303_vm4, %v1289_v50  ;;  %vm1480_vm4 = vcmask 9216  }
 0x396   : > { %1318 = vmatpush.msrb.mxu0 %v1288_v44 }
 0x398   : > { %1319 = vmatpush.msrb.mxu0 %v1287_v56 }
 0x39a   : > { %1320 = vmatpush.msrb.mxu0 %v1286_v58 }
 0x39c   : > { %1321 = vmatpush.msrb.mxu0 %v1285_v43 }
 0x39e   : > { %1322 = vmatpush.msrb.mxu0 %v1284_v1 }
 0x39f   : > { %1657 = vmatmul.msk.f32.vlgmr.msrb.gmra.mxu0 %vm1293_vm11, %v1290_v0 }
 0x3a7   : > { %1658 = vmatmul.msk.f32.gmra.mxu0 %vm1293_vm11, %v1291_v2 }
 0x3af   : > { %1659 = vmatmul.msk.f32.gmra.mxu0 %vm1293_vm11, %v1292_v3 }
 0x41c   : > { %v1324_v41 = vpop.f32.mrf.mxu0 }
 0x41d   : > { %1661 = vmatmul.msk.f32.vlgmr.msra.gmra.mxu3 %vm1341_vm12, %v1324_v41 }
 0x424   : > { %v1327_v4 = vpop.f32.mrf.mxu0 }
 0x425   : > { %1662 = vmatmul.msk.f32.gmra.mxu3 %vm1341_vm12, %v1327_v4 }
 0x42c   : > { %v1330_v5 = vpop.f32.mrf.mxu0 }
 0x42d   : > { %1663 = vmatmul.msk.f32.gmra.mxu3 %vm1341_vm12, %v1330_v5 }
 0x4a0   : > { %v1372_v36 = vpop.f32.mrf.mxu3 }
 0x4a1   : > { %v1373_v11 = vadd.f32 %v1717_v8, %v1372_v36 }
 0x4a3   : > { %v1384_v37 = vmul.f32 0.01, %v1373_v11  ;;  %vm1381_vm15 = vcmp.gt.f32.partialorder %v1373_v11, 0.0 }
 0x4a5   : > { %v1387_v35 = vsel %vm1381_vm15, %v1373_v11, %v1384_v37 }
 0x4a8   : > { %v1375_v39 = vpop.f32.mrf.mxu3 }
 0x4a9   : > { %v1376_v9 = vadd.f32 %v1717_v8, %v1375_v39 }
 0x4ab   : > { %v1385_v60 = vmul.f32 0.01, %v1376_v9  ;;  %vm1382_vm1 = vcmp.gt.f32.partialorder %v1376_v9, 0.0 }
 0x4ad   : > { %v1388_v14 = vsel %vm1382_vm1, %v1376_v9, %v1385_v60 }
 0x4b0   : > { %v1378_v10 = vpop.f32.mrf.mxu3 }
 0x4b1   : > { %v1379_v34 = vadd.f32 %v1717_v8, %v1378_v10 }
 0x4b3   : > { %vm1383_vm14 = vcmp.gt.f32.partialorder %v1379_v34, 0.0  ;;  %v1386_v12 = vmul.f32 0.01, %v1379_v34 }
 0x4b5   : > { %v1389_v13 = vsel %vm1383_vm14, %v1379_v34, %v1386_v12 }
 0x4b6   : > { %1664 = vmatpush.msk.msra.mxu0 %vm1233_vm2, %v1389_v13  ;;  %vm1422_vm2 = vcmask 121856  }
 0x4b8   : > { %1412 = vmatpush.msra.mxu0 %v1388_v14 }
 0x4ba   : > { %1413 = vmatpush.msra.mxu0 %v1387_v35 }
 0x4bb   : > { %1665 = vmatmul.msk.f32.vlgmr.msra.gmra.mxu0 %vm1391_vm3, %v1390_v15 }
 0x4bc   : > { %1472 = vmatpush.msrb.mxu0 %v1454_v61 }
 0x4be   : > { %1473 = vmatpush.msrb.mxu0 %v1453_v16 }
 0x4c0   : > { %1474 = vmatpush.msrb.mxu0 %v1452_v55 }
 0x4c2   : > { %1475 = vmatpush.msrb.mxu0 %v1451_v18 }
 0x538   : > { %v1415_v17 = vpop.f32.mrf.mxu0 }
 0x539   : > { %1667 = vmatmul.msk.f32.vlgmr.msrb.gmra.mxu3 %vm1422_vm2, %v1415_v17 }
 0x5bc   : > { %v1447_v20 = vpop.f32.mrf.mxu3 }
 0x5bd   : > { %v1448_v57 = vadd.f32 %v1718_v19, %v1447_v20 }
 0x5bf   : > { %v1450_v21 = vmax.f32 %v1448_v57, 0.0 }
 0x5c1   : > { %1668 = vmatmul.msk.f32.vlgmr.msrb.gmra.mxu0 %vm553_vm0, %v1450_v21 }
 0x63e   : > { %v1477_v45 = vpop.f32.mrf.mxu0 }
 0x63f   : > { %v1478_v23 = vadd.f32 %v1719_v22, %v1477_v45 }
 0x641   : > { %1481 = vst.msk [vmem:[%s517_s16] sm:$0x3] %vm1480_vm4, %v1478_v23 }
 0x642   : > { %1747 = shalt.err (!%p1744_p3)
}
 0x643   : > { %1674 = dma.vmem_to_hbm [thread:$0]  (%p1902_p5), %s1496_s17, 32, %s1498_s20, %s1483_s1  }
 0x644 PF: > { %p1680_p4 = scmp.ge.s32.totalorder %s1782_s21, 2  ;;  %s1509_s26 = sand.u32 1, %s1770_s18  }
 0x645   : > { %s1510_s30 = scalar_lea.sflag [#allocation3], %s1509_s26 }
 0x646   : > { %p1677_p7 = pnand %p1680_p4, %p1906_p6 }
 0x648   : > { %p1678_p8 = pneg %p1677_p7 }
 0x64a   : > { %1765 = dma.done.wait (%p1678_p8), %s1510_s30, 32  }
 0x64b   : > { %1767 = vsyncadd (%p1678_p8), %s1510_s30, 4294967264  ;;  %s2375_s21 = sld [smem:[#allocation6_spill]]  ;;  %s2378_s18 = smov %s1774_s19 }
 0x64c   : > { %s2376_s2 = sld [smem:[#allocation5_spill]] }
 0x64d   : > { %s2377_s20 = sld [smem:[#allocation7_spill]] }
 0x651   : > { %p25_p9 = scmp.ge.s32.totalorder %s2375_s21, 4  }
 0x652   : > { %s2379_s19 = smov %s2376_s2 }
 0x653   :  { %27 = sbr.rel (!%p25_p9) target bundleno = 7 (0x7), region = 121 }
 0x658   :  { %1516 = vsyncpa [#allocation3], 1 }
 0x659   :  { %1518 = vsyncpa [#allocation3 + $0x1], 1 }

</bundles_post_ra>
